<compile_context>
chip_gen: v7x
topology: tpu7x:2x2x1
jax: 0.10.0
libtpu: 0.0.40
codegen_flags: <defaults>
</compile_context>

<pallas_src>
import math

import jax
import jax.numpy as jnp
from jax.experimental import pallas as pl
from jax.experimental.pallas import tpu as pltpu


_PASS1_BUDGET = 8 * 1024 * 1024      # per pipeline buffer for x in the reduce pass
_PASS3_BUDGET = 4 * 1024 * 1024      # per pipeline buffer for x in the apply pass
_VMEM_LIMIT = 40 * 1024 * 1024       # explicit scoped-VMEM limit for the bulk passes


def _pick_tile(hw, c, itemsize, budget_bytes, batch):
    """Lane-dense tile over the flattened H*W axis.

    Multiple of 128 (partial last tile handled by a cdiv grid + masked writes),
    sized so the per-buffer footprint c*T*itemsize stays under `budget_bytes`,
    and shrunk if needed so the grid has >= 2 total steps (megacore sharding).
    """
    if hw <= 128:
        return hw                      # short row: block equals the full array dim
    max_t = max(128, (budget_bytes // max(1, c * itemsize)) // 128 * 128)
    t = min(max_t, (hw // 128) * 128)
    while batch * (-(-hw // t)) < 2 and t > 128:
        t = max(128, (t // 2) // 128 * 128)
    return t


# ---------------------------------------------------------------------------
# Pass 1: channel sum / max, lane-dense over H*W.
# ---------------------------------------------------------------------------
def _reduce_kernel(x_ref, red_ref):
    # x_ref: (1, C, T); red_ref: (1, 2, T) f32 [row 0 = channel SUM, row 1 = max]
    x = x_ref[0]
    # Store rows directly: no sublane concat relayout per grid step.
    red_ref[0, 0:1, :] = jnp.sum(x.astype(jnp.float32), axis=0, keepdims=True)
    red_ref[0, 1:2, :] = jnp.max(x, axis=0, keepdims=True).astype(jnp.float32)


# ---------------------------------------------------------------------------
# Pass 2: 7x7 conv (2 -> 1, no bias) + sigmoid on the tiny per-image map.
# Zero-padding (pad=3) is done in-kernel into a small VMEM scratch, so the
# reduced map makes exactly one HBM round trip.
# ---------------------------------------------------------------------------
def _conv_sigmoid_kernel(w_ref, red_ref, att_ref, pad_ref):
    # w_ref: (2, 49) f32 in SMEM (avg branch pre-scaled by 1/C).
    # red_ref: (1, 2, H, W) f32 (row 0 = channel sum, row 1 = channel max).
    # att_ref: (1, H, W) f32.
    # pad_ref: (2, H+6, W+6) f32 VMEM scratch.
    _, H, W = att_ref.shape

    # In-kernel zero padding: zero the scratch once, copy the interior.
    pad_ref[...] = jnp.zeros_like(pad_ref)
    pad_ref[0, 3:3 + H, 3:3 + W] = red_ref[0, 0]
    pad_ref[1, 3:3 + H, 3:3 + W] = red_ref[0, 1]

    # 7x7 cross-correlation; ky outer so only two (H, W+6) slabs are live at a
    # time (bounded vreg pressure); kx shift is a lane-offset slice.
    acc = jnp.zeros((H, W), jnp.float32)
    for ky in range(7):
        sa = pad_ref[0, ky:ky + H, :]          # (H, W+6) avg-branch slab
        sm = pad_ref[1, ky:ky + H, :]          # (H, W+6) max-branch slab
        for kx in range(7):
            acc = acc + w_ref[0, ky * 7 + kx] * sa[:, kx:kx + W]
            acc = acc + w_ref[1, ky * 7 + kx] * sm[:, kx:kx + W]
    att_ref[0] = jax.nn.sigmoid(acc)


# ---------------------------------------------------------------------------
# Pass 3: out = x * attention, lane-dense over H*W.
# ---------------------------------------------------------------------------
def _apply_kernel(x_ref, att_ref, o_ref):
    # x_ref: (1, C, T); att_ref: (1, 1, T) f32; o_ref: (1, C, T)
    att = att_ref[0, 0].astype(o_ref.dtype)      # cast the small map, not x
    o_ref[0] = x_ref[0] * att[None, :]


def spatial_attention(x, conv_weight):
    """x: (B, C, H, W); conv_weight: (1, 2, 7, 7). Matches SpatialAttention.forward."""
    B, C, H, W = x.shape
    HW = H * W
    itemsize = jnp.dtype(x.dtype).itemsize
    x_flat = x.reshape(B, C, HW)                 # lane-dense view for bulk traffic

    # ---- Pass 1: channel sum & max ----------------------------------------
    T1 = _pick_tile(HW, C, itemsize, _PASS1_BUDGET, B)
    n_t1 = pl.cdiv(HW, T1)
    red = pl.pallas_call(
        _reduce_kernel,
        out_shape=jax.ShapeDtypeStruct((B, 2, HW), jnp.float32),
        grid_spec=pltpu.PrefetchScalarGridSpec(
            num_scalar_prefetch=0,
            grid=(B, n_t1),
            in_specs=[pl.BlockSpec((1, C, T1), lambda b, t: (b, 0, t))],
            out_specs=pl.BlockSpec((1, 2, T1), lambda b, t: (b, 0, t)),
        ),
        compiler_params=pltpu.CompilerParams(
            dimension_semantics=("parallel", "parallel"),
            vmem_limit_bytes=_VMEM_LIMIT),
    )(x_flat)

    # ---- Host-side glue: only the tiny weight transform --------------------
    # Fold the 1/C of the mean into the avg-branch weights (sum * w/C == mean * w).
    w = conv_weight.reshape(2, 49).astype(jnp.float32)
    w = w * jnp.array([[1.0 / C], [1.0]], jnp.float32)
    red4 = red.reshape(B, 2, H, W)               # metadata-only reshape, no copy

    # ---- Pass 2: conv + sigmoid (padding done in-kernel) -------------------
    att = pl.pallas_call(
        _conv_sigmoid_kernel,
        out_shape=jax.ShapeDtypeStruct((B, H, W), jnp.float32),
        grid_spec=pltpu.PrefetchScalarGridSpec(
            num_scalar_prefetch=0,
            grid=(B,),
            in_specs=[
                pl.BlockSpec(memory_space=pltpu.MemorySpace.SMEM),   # (2, 49) weights
                pl.BlockSpec((1, 2, H, W), lambda b: (b, 0, 0, 0)),
            ],
            out_specs=pl.BlockSpec((1, H, W), lambda b: (b, 0, 0)),
            scratch_shapes=[pltpu.VMEM((2, H + 6, W + 6), jnp.float32)],
        ),
        compiler_params=pltpu.CompilerParams(
            dimension_semantics=("parallel",)),
    )(w, red4)

    # ---- Pass 3: out = x * att ---------------------------------------------
    T3 = _pick_tile(HW, C, itemsize, _PASS3_BUDGET, B)
    n_t3 = pl.cdiv(HW, T3)
    att_flat = att.reshape(B, 1, HW)
    out_flat = pl.pallas_call(
        _apply_kernel,
        out_shape=jax.ShapeDtypeStruct((B, C, HW), x.dtype),
        grid_spec=pltpu.PrefetchScalarGridSpec(
            num_scalar_prefetch=0,
            grid=(B, n_t3),
            in_specs=[
                pl.BlockSpec((1, C, T3), lambda b, t: (b, 0, t)),
                pl.BlockSpec((1, 1, T3), lambda b, t: (b, 0, t)),
            ],
            out_specs=pl.BlockSpec((1, C, T3), lambda b, t: (b, 0, t)),
        ),
        compiler_params=pltpu.CompilerParams(
            dimension_semantics=("parallel", "parallel"),
            vmem_limit_bytes=_VMEM_LIMIT),
    )(x_flat, att_flat)

    return out_flat.reshape(B, C, H, W)


def _reference(x, conv_weight):
    """Pure-JAX reference matching the PyTorch forward."""
    avg = jnp.mean(x, axis=1, keepdims=True)
    mx = jnp.max(x, axis=1, keepdims=True)
    cat = jnp.concatenate([avg, mx], axis=1)     # (B, 2, H, W)
    conv = jax.lax.conv_general_dilated(
        cat, conv_weight, window_strides=(1, 1), padding=((3, 3), (3, 3)),
        dimension_numbers=("NCHW", "OIHW", "NCHW"))
    return x * jax.nn.sigmoid(conv)


if __name__ == "__main__":
    B, C, H, W = 2, 4, 16, 16
    key = jax.random.PRNGKey(0)
    k_x, k_w = jax.random.split(key)

    x = jax.random.normal(k_x, (B, C, H, W), dtype=jnp.float32)

    # Deterministic init mimicking nn.Conv2d default (kaiming-uniform bound).
    fan_in = 2 * 7 * 7
    bound = 1.0 / math.sqrt(fan_in)
    conv_weight = jax.random.uniform(
        k_w, (1, 2, 7, 7), jnp.float32, minval=-bound, maxval=bound)

    out = jax.jit(spatial_attention)(x, conv_weight)
    out = jax.block_until_ready(out)

    ref = _reference(x, conv_weight)
    assert out.shape == ref.shape
    assert jnp.allclose(out, ref, atol=1e-5, rtol=1e-5), "mismatch vs reference"

    print("KERNEL_OK")
</pallas_src>

<mosaic_0001>
module attributes {stable_mosaic.version = 11 : i64} {
  func.func @_reduce_kernel(%arg0: i32, %arg1: i32, %arg2: memref<1x4x256xf32, #tpu.memory_space<vmem>>, %arg3: memref<1x2x256xf32, #tpu.memory_space<vmem>>) attributes {dimension_semantics = [#tpu.dimension_semantics<parallel>, #tpu.dimension_semantics<parallel>], iteration_bounds = array<i64: 2, 1>, scalar_prefetch = 0 : i64, scratch_operands = 0 : i64, tpu.core_type = #tpu.core_type<tc>, window_params = [{transform_indices = @transform_0, window_bounds = array<i64: 1, 4, 256>}, {transform_indices = @transform_1, window_bounds = array<i64: 1, 2, 256>}]} {
    %c0 = arith.constant 0 : index
    %c0_0 = arith.constant 0 : index
    %c0_1 = arith.constant 0 : index
    %0 = vector.load %arg2[%c0, %c0_0, %c0_1] : memref<1x4x256xf32, #tpu.memory_space<vmem>>, vector<1x4x256xf32>
    %1 = vector.shape_cast %0 : vector<1x4x256xf32> to vector<4x256xf32>
    %cst = arith.constant dense<0.000000e+00> : vector<256xf32>
    %2 = vector.multi_reduction <add>, %1, %cst [0] : vector<4x256xf32> to vector<256xf32>
    %3 = vector.shape_cast %2 : vector<256xf32> to vector<1x256xf32>
    %c0_2 = arith.constant 0 : index
    %c0_3 = arith.constant 0 : index
    %c0_4 = arith.constant 0 : index
    %4 = vector.load %arg3[%c0_2, %c0_3, %c0_4] : memref<1x2x256xf32, #tpu.memory_space<vmem>>, vector<1x1x256xf32>
    %5 = vector.shape_cast %4 : vector<1x1x256xf32> to vector<1x256xf32>
    %6 = vector.shape_cast %3 : vector<1x256xf32> to vector<1x1x256xf32>
    tpu.vector_store %arg3[%c0_2, %c0_3, %c0_4], %6 {strides = array<i32>} : memref<1x2x256xf32, #tpu.memory_space<vmem>>, vector<1x1x256xf32>,
    %cst_5 = arith.constant dense<0xFF800000> : vector<256xf32>
    %7 = vector.multi_reduction <maximumf>, %1, %cst_5 [0] : vector<4x256xf32> to vector<256xf32>
    %8 = vector.shape_cast %7 : vector<256xf32> to vector<1x256xf32>
    %c0_6 = arith.constant 0 : index
    %c1 = arith.constant 1 : index
    %c0_7 = arith.constant 0 : index
    %9 = vector.load %arg3[%c0_6, %c1, %c0_7] : memref<1x2x256xf32, #tpu.memory_space<vmem>>, vector<1x1x256xf32>
    %10 = vector.shape_cast %9 : vector<1x1x256xf32> to vector<1x256xf32>
    %11 = vector.shape_cast %8 : vector<1x256xf32> to vector<1x1x256xf32>
    tpu.vector_store %arg3[%c0_6, %c1, %c0_7], %11 {strides = array<i32>} : memref<1x2x256xf32, #tpu.memory_space<vmem>>, vector<1x1x256xf32>,
    return
  }
  func.func @transform_0(%arg0: i32, %arg1: i32) -> (i32, i32, i32) {
    %c0_i32 = arith.constant 0 : i32
    %c0_i32_0 = arith.constant 0 : i32
    return %arg0, %c0_i32, %arg1 : i32, i32, i32
  }
  func.func @transform_1(%arg0: i32, %arg1: i32) -> (i32, i32, i32) {
    %c0_i32 = arith.constant 0 : i32
    %c0_i32_0 = arith.constant 0 : i32
    return %arg0, %c0_i32, %arg1 : i32, i32, i32
  }
}

module attributes {stable_mosaic.version = 11 : i64} {
  func.func @_apply_kernel(%arg0: i32, %arg1: i32, %arg2: memref<1x4x256xf32, #tpu.memory_space<vmem>>, %arg3: memref<1x1x256xf32, #tpu.memory_space<vmem>>, %arg4: memref<1x4x256xf32, #tpu.memory_space<vmem>>) attributes {dimension_semantics = [#tpu.dimension_semantics<parallel>, #tpu.dimension_semantics<parallel>], iteration_bounds = array<i64: 2, 1>, scalar_prefetch = 0 : i64, scratch_operands = 0 : i64, tpu.core_type = #tpu.core_type<tc>, window_params = [{transform_indices = @transform_0, window_bounds = array<i64: 1, 4, 256>}, {transform_indices = @transform_1, window_bounds = array<i64: 1, 1, 256>}, {transform_indices = @transform_2, window_bounds = array<i64: 1, 4, 256>}]} {
    %c0 = arith.constant 0 : index
    %c0_0 = arith.constant 0 : index
    %c0_1 = arith.constant 0 : index
    %0 = vector.load %arg3[%c0, %c0_0, %c0_1] : memref<1x1x256xf32, #tpu.memory_space<vmem>>, vector<1x1x256xf32>
    %1 = vector.shape_cast %0 : vector<1x1x256xf32> to vector<256xf32>
    %c0_2 = arith.constant 0 : index
    %c0_3 = arith.constant 0 : index
    %c0_4 = arith.constant 0 : index
    %2 = vector.load %arg2[%c0_2, %c0_3, %c0_4] : memref<1x4x256xf32, #tpu.memory_space<vmem>>, vector<1x4x256xf32>
    %3 = vector.shape_cast %2 : vector<1x4x256xf32> to vector<4x256xf32>
    %4 = vector.shape_cast %1 : vector<256xf32> to vector<1x256xf32>
    %5 = vector.broadcast %4 : vector<1x256xf32> to vector<4x256xf32>
    %6 = arith.mulf %3, %5 : vector<4x256xf32>
    %c0_5 = arith.constant 0 : index
    %c0_6 = arith.constant 0 : index
    %c0_7 = arith.constant 0 : index
    %7 = vector.load %arg4[%c0_5, %c0_6, %c0_7] : memref<1x4x256xf32, #tpu.memory_space<vmem>>, vector<1x4x256xf32>
    %8 = vector.shape_cast %7 : vector<1x4x256xf32> to vector<4x256xf32>
    %9 = vector.shape_cast %6 : vector<4x256xf32> to vector<1x4x256xf32>
    tpu.vector_store %arg4[%c0_5, %c0_6, %c0_7], %9 {strides = array<i32>} : memref<1x4x256xf32, #tpu.memory_space<vmem>>, vector<1x4x256xf32>,
    return
  }
  func.func @transform_0(%arg0: i32, %arg1: i32) -> (i32, i32, i32) {
    %c0_i32 = arith.constant 0 : i32
    %c0_i32_0 = arith.constant 0 : i32
    return %arg0, %c0_i32, %arg1 : i32, i32, i32
  }
  func.func @transform_1(%arg0: i32, %arg1: i32) -> (i32, i32, i32) {
    %c0_i32 = arith.constant 0 : i32
    %c0_i32_0 = arith.constant 0 : i32
    return %arg0, %c0_i32, %arg1 : i32, i32, i32
  }
  func.func @transform_2(%arg0: i32, %arg1: i32) -> (i32, i32, i32) {
    %c0_i32 = arith.constant 0 : i32
    %c0_i32_0 = arith.constant 0 : i32
    return %arg0, %c0_i32, %arg1 : i32, i32, i32
  }
}

module attributes {stable_mosaic.version = 11 : i64} {
  func.func @_conv_sigmoid_kernel(%arg0: i32, %arg1: memref<2x49xf32, #tpu.memory_space<smem>>, %arg2: memref<1x2x16x16xf32, #tpu.memory_space<vmem>>, %arg3: memref<1x16x16xf32, #tpu.memory_space<vmem>>, %arg4: memref<2x22x22xf32, #tpu.memory_space<vmem>>) attributes {dimension_semantics = [#tpu.dimension_semantics<parallel>], iteration_bounds = array<i64: 2>, scalar_prefetch = 0 : i64, scratch_operands = 1 : i64, tpu.core_type = #tpu.core_type<tc>, window_params = [{transform_indices = @transform_0, window_bounds = array<i64: 2, 49>}, {transform_indices = @transform_1, window_bounds = array<i64: 1, 2, 16, 16>}, {transform_indices = @transform_2, window_bounds = array<i64: 1, 16, 16>}]} {
    %cst = arith.constant 0.000000e+00 : f32
    %0 = vector.broadcast %cst : f32 to vector<2x22x22xf32>
    %c0 = arith.constant 0 : index
    %c0_0 = arith.constant 0 : index
    %c0_1 = arith.constant 0 : index
    %1 = vector.load %arg4[%c0, %c0_0, %c0_1] : memref<2x22x22xf32, #tpu.memory_space<vmem>>, vector<2x22x22xf32>
    tpu.vector_store %arg4[%c0, %c0_0, %c0_1], %0 {strides = array<i32>} : memref<2x22x22xf32, #tpu.memory_space<vmem>>, vector<2x22x22xf32>,
    %c0_2 = arith.constant 0 : index
    %c0_3 = arith.constant 0 : index
    %c0_4 = arith.constant 0 : index
    %c0_5 = arith.constant 0 : index
    %2 = vector.load %arg2[%c0_2, %c0_3, %c0_4, %c0_5] : memref<1x2x16x16xf32, #tpu.memory_space<vmem>>, vector<1x1x16x16xf32>
    %3 = vector.shape_cast %2 : vector<1x1x16x16xf32> to vector<16x16xf32>
    %c0_6 = arith.constant 0 : index
    %c3 = arith.constant 3 : index
    %c3_7 = arith.constant 3 : index
    %4 = vector.load %arg4[%c0_6, %c3, %c3_7] : memref<2x22x22xf32, #tpu.memory_space<vmem>>, vector<1x16x16xf32>
    %5 = vector.shape_cast %4 : vector<1x16x16xf32> to vector<16x16xf32>
    %6 = vector.shape_cast %3 : vector<16x16xf32> to vector<1x16x16xf32>
    tpu.vector_store %arg4[%c0_6, %c3, %c3_7], %6 {strides = array<i32>} : memref<2x22x22xf32, #tpu.memory_space<vmem>>, vector<1x16x16xf32>,
    %c0_8 = arith.constant 0 : index
    %c1 = arith.constant 1 : index
    %c0_9 = arith.constant 0 : index
    %c0_10 = arith.constant 0 : index
    %7 = vector.load %arg2[%c0_8, %c1, %c0_9, %c0_10] : memref<1x2x16x16xf32, #tpu.memory_space<vmem>>, vector<1x1x16x16xf32>
    %8 = vector.shape_cast %7 : vector<1x1x16x16xf32> to vector<16x16xf32>
    %c1_11 = arith.constant 1 : index
    %c3_12 = arith.constant 3 : index
    %c3_13 = arith.constant 3 : index
    %9 = vector.load %arg4[%c1_11, %c3_12, %c3_13] : memref<2x22x22xf32, #tpu.memory_space<vmem>>, vector<1x16x16xf32>
    %10 = vector.shape_cast %9 : vector<1x16x16xf32> to vector<16x16xf32>
    %11 = vector.shape_cast %8 : vector<16x16xf32> to vector<1x16x16xf32>
    tpu.vector_store %arg4[%c1_11, %c3_12, %c3_13], %11 {strides = array<i32>} : memref<2x22x22xf32, #tpu.memory_space<vmem>>, vector<1x16x16xf32>,
    %cst_14 = arith.constant 0.000000e+00 : f32
    %12 = vector.broadcast %cst_14 : f32 to vector<16x16xf32>
    %c0_15 = arith.constant 0 : index
    %c0_16 = arith.constant 0 : index
    %c0_17 = arith.constant 0 : index
    %13 = vector.load %arg4[%c0_15, %c0_16, %c0_17] : memref<2x22x22xf32, #tpu.memory_space<vmem>>, vector<1x16x22xf32>
    %14 = vector.shape_cast %13 : vector<1x16x22xf32> to vector<16x22xf32>
    %c1_18 = arith.constant 1 : index
    %c0_19 = arith.constant 0 : index
    %c0_20 = arith.constant 0 : index
    %15 = vector.load %arg4[%c1_18, %c0_19, %c0_20] : memref<2x22x22xf32, #tpu.memory_space<vmem>>, vector<1x16x22xf32>
    %16 = vector.shape_cast %15 : vector<1x16x22xf32> to vector<16x22xf32>
    %c0_21 = arith.constant 0 : index
    %c0_22 = arith.constant 0 : index
    %17 = memref.load %arg1[%c0_21, %c0_22] : memref<2x49xf32, #tpu.memory_space<smem>>
    %18 = vector.extract_strided_slice %14 {offsets = [0, 0], sizes = [16, 16], strides = [1, 1]} : vector<16x22xf32> to vector<16x16xf32>
    %19 = vector.broadcast %17 : f32 to vector<16x16xf32>
    %20 = arith.mulf %19, %18 : vector<16x16xf32>
    %21 = arith.addf %12, %20 : vector<16x16xf32>
    %c1_23 = arith.constant 1 : index
    %c0_24 = arith.constant 0 : index
    %22 = memref.load %arg1[%c1_23, %c0_24] : memref<2x49xf32, #tpu.memory_space<smem>>
    %23 = vector.extract_strided_slice %16 {offsets = [0, 0], sizes = [16, 16], strides = [1, 1]} : vector<16x22xf32> to vector<16x16xf32>
    %24 = vector.broadcast %22 : f32 to vector<16x16xf32>
    %25 = arith.mulf %24, %23 : vector<16x16xf32>
    %26 = arith.addf %21, %25 : vector<16x16xf32>
    %c0_25 = arith.constant 0 : index
    %c1_26 = arith.constant 1 : index
    %27 = memref.load %arg1[%c0_25, %c1_26] : memref<2x49xf32, #tpu.memory_space<smem>>
    %28 = vector.extract_strided_slice %14 {offsets = [0, 1], sizes = [16, 16], strides = [1, 1]} : vector<16x22xf32> to vector<16x16xf32>
    %29 = vector.broadcast %27 : f32 to vector<16x16xf32>
    %30 = arith.mulf %29, %28 : vector<16x16xf32>
    %31 = arith.addf %26, %30 : vector<16x16xf32>
    %c1_27 = arith.constant 1 : index
    %c1_28 = arith.constant 1 : index
    %32 = memref.load %arg1[%c1_27, %c1_28] : memref<2x49xf32, #tpu.memory_space<smem>>
    %33 = vector.extract_strided_slice %16 {offsets = [0, 1], sizes = [16, 16], strides = [1, 1]} : vector<16x22xf32> to vector<16x16xf32>
    %34 = vector.broadcast %32 : f32 to vector<16x16xf32>
    %35 = arith.mulf %34, %33 : vector<16x16xf32>
    %36 = arith.addf %31, %35 : vector<16x16xf32>
    %c0_29 = arith.constant 0 : index
    %c2 = arith.constant 2 : index
    %37 = memref.load %arg1[%c0_29, %c2] : memref<2x49xf32, #tpu.memory_space<smem>>
    %38 = vector.extract_strided_slice %14 {offsets = [0, 2], sizes = [16, 16], strides = [1, 1]} : vector<16x22xf32> to vector<16x16xf32>
    %39 = vector.broadcast %37 : f32 to vector<16x16xf32>
    %40 = arith.mulf %39, %38 : vector<16x16xf32>
    %41 = arith.addf %36, %40 : vector<16x16xf32>
    %c1_30 = arith.constant 1 : index
    %c2_31 = arith.constant 2 : index
    %42 = memref.load %arg1[%c1_30, %c2_31] : memref<2x49xf32, #tpu.memory_space<smem>>
    %43 = vector.extract_strided_slice %16 {offsets = [0, 2], sizes = [16, 16], strides = [1, 1]} : vector<16x22xf32> to vector<16x16xf32>
    %44 = vector.broadcast %42 : f32 to vector<16x16xf32>
    %45 = arith.mulf %44, %43 : vector<16x16xf32>
    %46 = arith.addf %41, %45 : vector<16x16xf32>
    %c0_32 = arith.constant 0 : index
    %c3_33 = arith.constant 3 : index
    %47 = memref.load %arg1[%c0_32, %c3_33] : memref<2x49xf32, #tpu.memory_space<smem>>
    %48 = vector.extract_strided_slice %14 {offsets = [0, 3], sizes = [16, 16], strides = [1, 1]} : vector<16x22xf32> to vector<16x16xf32>
    %49 = vector.broadcast %47 : f32 to vector<16x16xf32>
    %50 = arith.mulf %49, %48 : vector<16x16xf32>
    %51 = arith.addf %46, %50 : vector<16x16xf32>
    %c1_34 = arith.constant 1 : index
    %c3_35 = arith.constant 3 : index
    %52 = memref.load %arg1[%c1_34, %c3_35] : memref<2x49xf32, #tpu.memory_space<smem>>
    %53 = vector.extract_strided_slice %16 {offsets = [0, 3], sizes = [16, 16], strides = [1, 1]} : vector<16x22xf32> to vector<16x16xf32>
    %54 = vector.broadcast %52 : f32 to vector<16x16xf32>
    %55 = arith.mulf %54, %53 : vector<16x16xf32>
    %56 = arith.addf %51, %55 : vector<16x16xf32>
    %c0_36 = arith.constant 0 : index
    %c4 = arith.constant 4 : index
    %57 = memref.load %arg1[%c0_36, %c4] : memref<2x49xf32, #tpu.memory_space<smem>>
    %58 = vector.extract_strided_slice %14 {offsets = [0, 4], sizes = [16, 16], strides = [1, 1]} : vector<16x22xf32> to vector<16x16xf32>
    %59 = vector.broadcast %57 : f32 to vector<16x16xf32>
    %60 = arith.mulf %59, %58 : vector<16x16xf32>
    %61 = arith.addf %56, %60 : vector<16x16xf32>
    %c1_37 = arith.constant 1 : index
    %c4_38 = arith.constant 4 : index
    %62 = memref.load %arg1[%c1_37, %c4_38] : memref<2x49xf32, #tpu.memory_space<smem>>
    %63 = vector.extract_strided_slice %16 {offsets = [0, 4], sizes = [16, 16], strides = [1, 1]} : vector<16x22xf32> to vector<16x16xf32>
    %64 = vector.broadcast %62 : f32 to vector<16x16xf32>
    %65 = arith.mulf %64, %63 : vector<16x16xf32>
    %66 = arith.addf %61, %65 : vector<16x16xf32>
    %c0_39 = arith.constant 0 : index
    %c5 = arith.constant 5 : index
    %67 = memref.load %arg1[%c0_39, %c5] : memref<2x49xf32, #tpu.memory_space<smem>>
    %68 = vector.extract_strided_slice %14 {offsets = [0, 5], sizes = [16, 16], strides = [1, 1]} : vector<16x22xf32> to vector<16x16xf32>
    %69 = vector.broadcast %67 : f32 to vector<16x16xf32>
    %70 = arith.mulf %69, %68 : vector<16x16xf32>
    %71 = arith.addf %66, %70 : vector<16x16xf32>
    %c1_40 = arith.constant 1 : index
    %c5_41 = arith.constant 5 : index
    %72 = memref.load %arg1[%c1_40, %c5_41] : memref<2x49xf32, #tpu.memory_space<smem>>
    %73 = vector.extract_strided_slice %16 {offsets = [0, 5], sizes = [16, 16], strides = [1, 1]} : vector<16x22xf32> to vector<16x16xf32>
    %74 = vector.broadcast %72 : f32 to vector<16x16xf32>
    %75 = arith.mulf %74, %73 : vector<16x16xf32>
    %76 = arith.addf %71, %75 : vector<16x16xf32>
    %c0_42 = arith.constant 0 : index
    %c6 = arith.constant 6 : index
    %77 = memref.load %arg1[%c0_42, %c6] : memref<2x49xf32, #tpu.memory_space<smem>>
    %78 = vector.extract_strided_slice %14 {offsets = [0, 6], sizes = [16, 16], strides = [1, 1]} : vector<16x22xf32> to vector<16x16xf32>
    %79 = vector.broadcast %77 : f32 to vector<16x16xf32>
    %80 = arith.mulf %79, %78 : vector<16x16xf32>
    %81 = arith.addf %76, %80 : vector<16x16xf32>
    %c1_43 = arith.constant 1 : index
    %c6_44 = arith.constant 6 : index
    %82 = memref.load %arg1[%c1_43, %c6_44] : memref<2x49xf32, #tpu.memory_space<smem>>
    %83 = vector.extract_strided_slice %16 {offsets = [0, 6], sizes = [16, 16], strides = [1, 1]} : vector<16x22xf32> to vector<16x16xf32>
    %84 = vector.broadcast %82 : f32 to vector<16x16xf32>
    %85 = arith.mulf %84, %83 : vector<16x16xf32>
    %86 = arith.addf %81, %85 : vector<16x16xf32>
    %c0_45 = arith.constant 0 : index
    %c1_46 = arith.constant 1 : index
    %c0_47 = arith.constant 0 : index
    %87 = vector.load %arg4[%c0_45, %c1_46, %c0_47] : memref<2x22x22xf32, #tpu.memory_space<vmem>>, vector<1x16x22xf32>
    %88 = vector.shape_cast %87 : vector<1x16x22xf32> to vector<16x22xf32>
    %c1_48 = arith.constant 1 : index
    %c1_49 = arith.constant 1 : index
    %c0_50 = arith.constant 0 : index
    %89 = vector.load %arg4[%c1_48, %c1_49, %c0_50] : memref<2x22x22xf32, #tpu.memory_space<vmem>>, vector<1x16x22xf32>
    %90 = vector.shape_cast %89 : vector<1x16x22xf32> to vector<16x22xf32>
    %c0_51 = arith.constant 0 : index
    %c7 = arith.constant 7 : index
    %91 = memref.load %arg1[%c0_51, %c7] : memref<2x49xf32, #tpu.memory_space<smem>>
    %92 = vector.extract_strided_slice %88 {offsets = [0, 0], sizes = [16, 16], strides = [1, 1]} : vector<16x22xf32> to vector<16x16xf32>
    %93 = vector.broadcast %91 : f32 to vector<16x16xf32>
    %94 = arith.mulf %93, %92 : vector<16x16xf32>
    %95 = arith.addf %86, %94 : vector<16x16xf32>
    %c1_52 = arith.constant 1 : index
    %c7_53 = arith.constant 7 : index
    %96 = memref.load %arg1[%c1_52, %c7_53] : memref<2x49xf32, #tpu.memory_space<smem>>
    %97 = vector.extract_strided_slice %90 {offsets = [0, 0], sizes = [16, 16], strides = [1, 1]} : vector<16x22xf32> to vector<16x16xf32>
    %98 = vector.broadcast %96 : f32 to vector<16x16xf32>
    %99 = arith.mulf %98, %97 : vector<16x16xf32>
    %100 = arith.addf %95, %99 : vector<16x16xf32>
    %c0_54 = arith.constant 0 : index
    %c8 = arith.constant 8 : index
    %101 = memref.load %arg1[%c0_54, %c8] : memref<2x49xf32, #tpu.memory_space<smem>>
    %102 = vector.extract_strided_slice %88 {offsets = [0, 1], sizes = [16, 16], strides = [1, 1]} : vector<16x22xf32> to vector<16x16xf32>
    %103 = vector.broadcast %101 : f32 to vector<16x16xf32>
    %104 = arith.mulf %103, %102 : vector<16x16xf32>
    %105 = arith.addf %100, %104 : vector<16x16xf32>
    %c1_55 = arith.constant 1 : index
    %c8_56 = arith.constant 8 : index
    %106 = memref.load %arg1[%c1_55, %c8_56] : memref<2x49xf32, #tpu.memory_space<smem>>
    %107 = vector.extract_strided_slice %90 {offsets = [0, 1], sizes = [16, 16], strides = [1, 1]} : vector<16x22xf32> to vector<16x16xf32>
    %108 = vector.broadcast %106 : f32 to vector<16x16xf32>
    %109 = arith.mulf %108, %107 : vector<16x16xf32>
    %110 = arith.addf %105, %109 : vector<16x16xf32>
    %c0_57 = arith.constant 0 : index
    %c9 = arith.constant 9 : index
    %111 = memref.load %arg1[%c0_57, %c9] : memref<2x49xf32, #tpu.memory_space<smem>>
    %112 = vector.extract_strided_slice %88 {offsets = [0, 2], sizes = [16, 16], strides = [1, 1]} : vector<16x22xf32> to vector<16x16xf32>
    %113 = vector.broadcast %111 : f32 to vector<16x16xf32>
    %114 = arith.mulf %113, %112 : vector<16x16xf32>
    %115 = arith.addf %110, %114 : vector<16x16xf32>
    %c1_58 = arith.constant 1 : index
    %c9_59 = arith.constant 9 : index
    %116 = memref.load %arg1[%c1_58, %c9_59] : memref<2x49xf32, #tpu.memory_space<smem>>
    %117 = vector.extract_strided_slice %90 {offsets = [0, 2], sizes = [16, 16], strides = [1, 1]} : vector<16x22xf32> to vector<16x16xf32>
    %118 = vector.broadcast %116 : f32 to vector<16x16xf32>
    %119 = arith.mulf %118, %117 : vector<16x16xf32>
    %120 = arith.addf %115, %119 : vector<16x16xf32>
    %c0_60 = arith.constant 0 : index
    %c10 = arith.constant 10 : index
    %121 = memref.load %arg1[%c0_60, %c10] : memref<2x49xf32, #tpu.memory_space<smem>>
    %122 = vector.extract_strided_slice %88 {offsets = [0, 3], sizes = [16, 16], strides = [1, 1]} : vector<16x22xf32> to vector<16x16xf32>
    %123 = vector.broadcast %121 : f32 to vector<16x16xf32>
    %124 = arith.mulf %123, %122 : vector<16x16xf32>
    %125 = arith.addf %120, %124 : vector<16x16xf32>
    %c1_61 = arith.constant 1 : index
    %c10_62 = arith.constant 10 : index
    %126 = memref.load %arg1[%c1_61, %c10_62] : memref<2x49xf32, #tpu.memory_space<smem>>
    %127 = vector.extract_strided_slice %90 {offsets = [0, 3], sizes = [16, 16], strides = [1, 1]} : vector<16x22xf32> to vector<16x16xf32>
    %128 = vector.broadcast %126 : f32 to vector<16x16xf32>
    %129 = arith.mulf %128, %127 : vector<16x16xf32>
    %130 = arith.addf %125, %129 : vector<16x16xf32>
    %c0_63 = arith.constant 0 : index
    %c11 = arith.constant 11 : index
    %131 = memref.load %arg1[%c0_63, %c11] : memref<2x49xf32, #tpu.memory_space<smem>>
    %132 = vector.extract_strided_slice %88 {offsets = [0, 4], sizes = [16, 16], strides = [1, 1]} : vector<16x22xf32> to vector<16x16xf32>
    %133 = vector.broadcast %131 : f32 to vector<16x16xf32>
    %134 = arith.mulf %133, %132 : vector<16x16xf32>
    %135 = arith.addf %130, %134 : vector<16x16xf32>
    %c1_64 = arith.constant 1 : index
    %c11_65 = arith.constant 11 : index
    %136 = memref.load %arg1[%c1_64, %c11_65] : memref<2x49xf32, #tpu.memory_space<smem>>
    %137 = vector.extract_strided_slice %90 {offsets = [0, 4], sizes = [16, 16], strides = [1, 1]} : vector<16x22xf32> to vector<16x16xf32>
    %138 = vector.broadcast %136 : f32 to vector<16x16xf32>
    %139 = arith.mulf %138, %137 : vector<16x16xf32>
    %140 = arith.addf %135, %139 : vector<16x16xf32>
    %c0_66 = arith.constant 0 : index
    %c12 = arith.constant 12 : index
    %141 = memref.load %arg1[%c0_66, %c12] : memref<2x49xf32, #tpu.memory_space<smem>>
    %142 = vector.extract_strided_slice %88 {offsets = [0, 5], sizes = [16, 16], strides = [1, 1]} : vector<16x22xf32> to vector<16x16xf32>
    %143 = vector.broadcast %141 : f32 to vector<16x16xf32>
    %144 = arith.mulf %143, %142 : vector<16x16xf32>
    %145 = arith.addf %140, %144 : vector<16x16xf32>
    %c1_67 = arith.constant 1 : index
    %c12_68 = arith.constant 12 : index
    %146 = memref.load %arg1[%c1_67, %c12_68] : memref<2x49xf32, #tpu.memory_space<smem>>
    %147 = vector.extract_strided_slice %90 {offsets = [0, 5], sizes = [16, 16], strides = [1, 1]} : vector<16x22xf32> to vector<16x16xf32>
    %148 = vector.broadcast %146 : f32 to vector<16x16xf32>
    %149 = arith.mulf %148, %147 : vector<16x16xf32>
    %150 = arith.addf %145, %149 : vector<16x16xf32>
    %c0_69 = arith.constant 0 : index
    %c13 = arith.constant 13 : index
    %151 = memref.load %arg1[%c0_69, %c13] : memref<2x49xf32, #tpu.memory_space<smem>>
    %152 = vector.extract_strided_slice %88 {offsets = [0, 6], sizes = [16, 16], strides = [1, 1]} : vector<16x22xf32> to vector<16x16xf32>
    %153 = vector.broadcast %151 : f32 to vector<16x16xf32>
    %154 = arith.mulf %153, %152 : vector<16x16xf32>
    %155 = arith.addf %150, %154 : vector<16x16xf32>
    %c1_70 = arith.constant 1 : index
    %c13_71 = arith.constant 13 : index
    %156 = memref.load %arg1[%c1_70, %c13_71] : memref<2x49xf32, #tpu.memory_space<smem>>
    %157 = vector.extract_strided_slice %90 {offsets = [0, 6], sizes = [16, 16], strides = [1, 1]} : vector<16x22xf32> to vector<16x16xf32>
    %158 = vector.broadcast %156 : f32 to vector<16x16xf32>
    %159 = arith.mulf %158, %157 : vector<16x16xf32>
    %160 = arith.addf %155, %159 : vector<16x16xf32>
    %c0_72 = arith.constant 0 : index
    %c2_73 = arith.constant 2 : index
    %c0_74 = arith.constant 0 : index
    %161 = vector.load %arg4[%c0_72, %c2_73, %c0_74] : memref<2x22x22xf32, #tpu.memory_space<vmem>>, vector<1x16x22xf32>
    %162 = vector.shape_cast %161 : vector<1x16x22xf32> to vector<16x22xf32>
    %c1_75 = arith.constant 1 : index
    %c2_76 = arith.constant 2 : index
    %c0_77 = arith.constant 0 : index
    %163 = vector.load %arg4[%c1_75, %c2_76, %c0_77] : memref<2x22x22xf32, #tpu.memory_space<vmem>>, vector<1x16x22xf32>
    %164 = vector.shape_cast %163 : vector<1x16x22xf32> to vector<16x22xf32>
    %c0_78 = arith.constant 0 : index
    %c14 = arith.constant 14 : index
    %165 = memref.load %arg1[%c0_78, %c14] : memref<2x49xf32, #tpu.memory_space<smem>>
    %166 = vector.extract_strided_slice %162 {offsets = [0, 0], sizes = [16, 16], strides = [1, 1]} : vector<16x22xf32> to vector<16x16xf32>
    %167 = vector.broadcast %165 : f32 to vector<16x16xf32>
    %168 = arith.mulf %167, %166 : vector<16x16xf32>
    %169 = arith.addf %160, %168 : vector<16x16xf32>
    %c1_79 = arith.constant 1 : index
    %c14_80 = arith.constant 14 : index
    %170 = memref.load %arg1[%c1_79, %c14_80] : memref<2x49xf32, #tpu.memory_space<smem>>
    %171 = vector.extract_strided_slice %164 {offsets = [0, 0], sizes = [16, 16], strides = [1, 1]} : vector<16x22xf32> to vector<16x16xf32>
    %172 = vector.broadcast %170 : f32 to vector<16x16xf32>
    %173 = arith.mulf %172, %171 : vector<16x16xf32>
    %174 = arith.addf %169, %173 : vector<16x16xf32>
    %c0_81 = arith.constant 0 : index
    %c15 = arith.constant 15 : index
    %175 = memref.load %arg1[%c0_81, %c15] : memref<2x49xf32, #tpu.memory_space<smem>>
    %176 = vector.extract_strided_slice %162 {offsets = [0, 1], sizes = [16, 16], strides = [1, 1]} : vector<16x22xf32> to vector<16x16xf32>
    %177 = vector.broadcast %175 : f32 to vector<16x16xf32>
    %178 = arith.mulf %177, %176 : vector<16x16xf32>
    %179 = arith.addf %174, %178 : vector<16x16xf32>
    %c1_82 = arith.constant 1 : index
    %c15_83 = arith.constant 15 : index
    %180 = memref.load %arg1[%c1_82, %c15_83] : memref<2x49xf32, #tpu.memory_space<smem>>
    %181 = vector.extract_strided_slice %164 {offsets = [0, 1], sizes = [16, 16], strides = [1, 1]} : vector<16x22xf32> to vector<16x16xf32>
    %182 = vector.broadcast %180 : f32 to vector<16x16xf32>
    %183 = arith.mulf %182, %181 : vector<16x16xf32>
    %184 = arith.addf %179, %183 : vector<16x16xf32>
    %c0_84 = arith.constant 0 : index
    %c16 = arith.constant 16 : index
    %185 = memref.load %arg1[%c0_84, %c16] : memref<2x49xf32, #tpu.memory_space<smem>>
    %186 = vector.extract_strided_slice %162 {offsets = [0, 2], sizes = [16, 16], strides = [1, 1]} : vector<16x22xf32> to vector<16x16xf32>
    %187 = vector.broadcast %185 : f32 to vector<16x16xf32>
    %188 = arith.mulf %187, %186 : vector<16x16xf32>
    %189 = arith.addf %184, %188 : vector<16x16xf32>
    %c1_85 = arith.constant 1 : index
    %c16_86 = arith.constant 16 : index
    %190 = memref.load %arg1[%c1_85, %c16_86] : memref<2x49xf32, #tpu.memory_space<smem>>
    %191 = vector.extract_strided_slice %164 {offsets = [0, 2], sizes = [16, 16], strides = [1, 1]} : vector<16x22xf32> to vector<16x16xf32>
    %192 = vector.broadcast %190 : f32 to vector<16x16xf32>
    %193 = arith.mulf %192, %191 : vector<16x16xf32>
    %194 = arith.addf %189, %193 : vector<16x16xf32>
    %c0_87 = arith.constant 0 : index
    %c17 = arith.constant 17 : index
    %195 = memref.load %arg1[%c0_87, %c17] : memref<2x49xf32, #tpu.memory_space<smem>>
    %196 = vector.extract_strided_slice %162 {offsets = [0, 3], sizes = [16, 16], strides = [1, 1]} : vector<16x22xf32> to vector<16x16xf32>
    %197 = vector.broadcast %195 : f32 to vector<16x16xf32>
    %198 = arith.mulf %197, %196 : vector<16x16xf32>
    %199 = arith.addf %194, %198 : vector<16x16xf32>
    %c1_88 = arith.constant 1 : index
    %c17_89 = arith.constant 17 : index
    %200 = memref.load %arg1[%c1_88, %c17_89] : memref<2x49xf32, #tpu.memory_space<smem>>
    %201 = vector.extract_strided_slice %164 {offsets = [0, 3], sizes = [16, 16], strides = [1, 1]} : vector<16x22xf32> to vector<16x16xf32>
    %202 = vector.broadcast %200 : f32 to vector<16x16xf32>
    %203 = arith.mulf %202, %201 : vector<16x16xf32>
    %204 = arith.addf %199, %203 : vector<16x16xf32>
    %c0_90 = arith.constant 0 : index
    %c18 = arith.constant 18 : index
    %205 = memref.load %arg1[%c0_90, %c18] : memref<2x49xf32, #tpu.memory_space<smem>>
    %206 = vector.extract_strided_slice %162 {offsets = [0, 4], sizes = [16, 16], strides = [1, 1]} : vector<16x22xf32> to vector<16x16xf32>
    %207 = vector.broadcast %205 : f32 to vector<16x16xf32>
    %208 = arith.mulf %207, %206 : vector<16x16xf32>
    %209 = arith.addf %204, %208 : vector<16x16xf32>
    %c1_91 = arith.constant 1 : index
    %c18_92 = arith.constant 18 : index
    %210 = memref.load %arg1[%c1_91, %c18_92] : memref<2x49xf32, #tpu.memory_space<smem>>
    %211 = vector.extract_strided_slice %164 {offsets = [0, 4], sizes = [16, 16], strides = [1, 1]} : vector<16x22xf32> to vector<16x16xf32>
    %212 = vector.broadcast %210 : f32 to vector<16x16xf32>
    %213 = arith.mulf %212, %211 : vector<16x16xf32>
    %214 = arith.addf %209, %213 : vector<16x16xf32>
    %c0_93 = arith.constant 0 : index
    %c19 = arith.constant 19 : index
    %215 = memref.load %arg1[%c0_93, %c19] : memref<2x49xf32, #tpu.memory_space<smem>>
    %216 = vector.extract_strided_slice %162 {offsets = [0, 5], sizes = [16, 16], strides = [1, 1]} : vector<16x22xf32> to vector<16x16xf32>
    %217 = vector.broadcast %215 : f32 to vector<16x16xf32>
    %218 = arith.mulf %217, %216 : vector<16x16xf32>
    %219 = arith.addf %214, %218 : vector<16x16xf32>
    %c1_94 = arith.constant 1 : index
    %c19_95 = arith.constant 19 : index
    %220 = memref.load %arg1[%c1_94, %c19_95] : memref<2x49xf32, #tpu.memory_space<smem>>
    %221 = vector.extract_strided_slice %164 {offsets = [0, 5], sizes = [16, 16], strides = [1, 1]} : vector<16x22xf32> to vector<16x16xf32>
    %222 = vector.broadcast %220 : f32 to vector<16x16xf32>
    %223 = arith.mulf %222, %221 : vector<16x16xf32>
    %224 = arith.addf %219, %223 : vector<16x16xf32>
    %c0_96 = arith.constant 0 : index
    %c20 = arith.constant 20 : index
    %225 = memref.load %arg1[%c0_96, %c20] : memref<2x49xf32, #tpu.memory_space<smem>>
    %226 = vector.extract_strided_slice %162 {offsets = [0, 6], sizes = [16, 16], strides = [1, 1]} : vector<16x22xf32> to vector<16x16xf32>
    %227 = vector.broadcast %225 : f32 to vector<16x16xf32>
    %228 = arith.mulf %227, %226 : vector<16x16xf32>
    %229 = arith.addf %224, %228 : vector<16x16xf32>
    %c1_97 = arith.constant 1 : index
    %c20_98 = arith.constant 20 : index
    %230 = memref.load %arg1[%c1_97, %c20_98] : memref<2x49xf32, #tpu.memory_space<smem>>
    %231 = vector.extract_strided_slice %164 {offsets = [0, 6], sizes = [16, 16], strides = [1, 1]} : vector<16x22xf32> to vector<16x16xf32>
    %232 = vector.broadcast %230 : f32 to vector<16x16xf32>
    %233 = arith.mulf %232, %231 : vector<16x16xf32>
    %234 = arith.addf %229, %233 : vector<16x16xf32>
    %c0_99 = arith.constant 0 : index
    %c3_100 = arith.constant 3 : index
    %c0_101 = arith.constant 0 : index
    %235 = vector.load %arg4[%c0_99, %c3_100, %c0_101] : memref<2x22x22xf32, #tpu.memory_space<vmem>>, vector<1x16x22xf32>
    %236 = vector.shape_cast %235 : vector<1x16x22xf32> to vector<16x22xf32>
    %c1_102 = arith.constant 1 : index
    %c3_103 = arith.constant 3 : index
    %c0_104 = arith.constant 0 : index
    %237 = vector.load %arg4[%c1_102, %c3_103, %c0_104] : memref<2x22x22xf32, #tpu.memory_space<vmem>>, vector<1x16x22xf32>
    %238 = vector.shape_cast %237 : vector<1x16x22xf32> to vector<16x22xf32>
    %c0_105 = arith.constant 0 : index
    %c21 = arith.constant 21 : index
    %239 = memref.load %arg1[%c0_105, %c21] : memref<2x49xf32, #tpu.memory_space<smem>>
    %240 = vector.extract_strided_slice %236 {offsets = [0, 0], sizes = [16, 16], strides = [1, 1]} : vector<16x22xf32> to vector<16x16xf32>
    %241 = vector.broadcast %239 : f32 to vector<16x16xf32>
    %242 = arith.mulf %241, %240 : vector<16x16xf32>
    %243 = arith.addf %234, %242 : vector<16x16xf32>
    %c1_106 = arith.constant 1 : index
    %c21_107 = arith.constant 21 : index
    %244 = memref.load %arg1[%c1_106, %c21_107] : memref<2x49xf32, #tpu.memory_space<smem>>
    %245 = vector.extract_strided_slice %238 {offsets = [0, 0], sizes = [16, 16], strides = [1, 1]} : vector<16x22xf32> to vector<16x16xf32>
    %246 = vector.broadcast %244 : f32 to vector<16x16xf32>
    %247 = arith.mulf %246, %245 : vector<16x16xf32>
    %248 = arith.addf %243, %247 : vector<16x16xf32>
    %c0_108 = arith.constant 0 : index
    %c22 = arith.constant 22 : index
    %249 = memref.load %arg1[%c0_108, %c22] : memref<2x49xf32, #tpu.memory_space<smem>>
    %250 = vector.extract_strided_slice %236 {offsets = [0, 1], sizes = [16, 16], strides = [1, 1]} : vector<16x22xf32> to vector<16x16xf32>
    %251 = vector.broadcast %249 : f32 to vector<16x16xf32>
    %252 = arith.mulf %251, %250 : vector<16x16xf32>
    %253 = arith.addf %248, %252 : vector<16x16xf32>
    %c1_109 = arith.constant 1 : index
    %c22_110 = arith.constant 22 : index
    %254 = memref.load %arg1[%c1_109, %c22_110] : memref<2x49xf32, #tpu.memory_space<smem>>
    %255 = vector.extract_strided_slice %238 {offsets = [0, 1], sizes = [16, 16], strides = [1, 1]} : vector<16x22xf32> to vector<16x16xf32>
    %256 = vector.broadcast %254 : f32 to vector<16x16xf32>
    %257 = arith.mulf %256, %255 : vector<16x16xf32>
    %258 = arith.addf %253, %257 : vector<16x16xf32>
    %c0_111 = arith.constant 0 : index
    %c23 = arith.constant 23 : index
    %259 = memref.load %arg1[%c0_111, %c23] : memref<2x49xf32, #tpu.memory_space<smem>>
    %260 = vector.extract_strided_slice %236 {offsets = [0, 2], sizes = [16, 16], strides = [1, 1]} : vector<16x22xf32> to vector<16x16xf32>
    %261 = vector.broadcast %259 : f32 to vector<16x16xf32>
    %262 = arith.mulf %261, %260 : vector<16x16xf32>
    %263 = arith.addf %258, %262 : vector<16x16xf32>
    %c1_112 = arith.constant 1 : index
    %c23_113 = arith.constant 23 : index
    %264 = memref.load %arg1[%c1_112, %c23_113] : memref<2x49xf32, #tpu.memory_space<smem>>
    %265 = vector.extract_strided_slice %238 {offsets = [0, 2], sizes = [16, 16], strides = [1, 1]} : vector<16x22xf32> to vector<16x16xf32>
    %266 = vector.broadcast %264 : f32 to vector<16x16xf32>
    %267 = arith.mulf %266, %265 : vector<16x16xf32>
    %268 = arith.addf %263, %267 : vector<16x16xf32>
    %c0_114 = arith.constant 0 : index
    %c24 = arith.constant 24 : index
    %269 = memref.load %arg1[%c0_114, %c24] : memref<2x49xf32, #tpu.memory_space<smem>>
    %270 = vector.extract_strided_slice %236 {offsets = [0, 3], sizes = [16, 16], strides = [1, 1]} : vector<16x22xf32> to vector<16x16xf32>
    %271 = vector.broadcast %269 : f32 to vector<16x16xf32>
    %272 = arith.mulf %271, %270 : vector<16x16xf32>
    %273 = arith.addf %268, %272 : vector<16x16xf32>
    %c1_115 = arith.constant 1 : index
    %c24_116 = arith.constant 24 : index
    %274 = memref.load %arg1[%c1_115, %c24_116] : memref<2x49xf32, #tpu.memory_space<smem>>
    %275 = vector.extract_strided_slice %238 {offsets = [0, 3], sizes = [16, 16], strides = [1, 1]} : vector<16x22xf32> to vector<16x16xf32>
    %276 = vector.broadcast %274 : f32 to vector<16x16xf32>
    %277 = arith.mulf %276, %275 : vector<16x16xf32>
    %278 = arith.addf %273, %277 : vector<16x16xf32>
    %c0_117 = arith.constant 0 : index
    %c25 = arith.constant 25 : index
    %279 = memref.load %arg1[%c0_117, %c25] : memref<2x49xf32, #tpu.memory_space<smem>>
    %280 = vector.extract_strided_slice %236 {offsets = [0, 4], sizes = [16, 16], strides = [1, 1]} : vector<16x22xf32> to vector<16x16xf32>
    %281 = vector.broadcast %279 : f32 to vector<16x16xf32>
    %282 = arith.mulf %281, %280 : vector<16x16xf32>
    %283 = arith.addf %278, %282 : vector<16x16xf32>
    %c1_118 = arith.constant 1 : index
    %c25_119 = arith.constant 25 : index
    %284 = memref.load %arg1[%c1_118, %c25_119] : memref<2x49xf32, #tpu.memory_space<smem>>
    %285 = vector.extract_strided_slice %238 {offsets = [0, 4], sizes = [16, 16], strides = [1, 1]} : vector<16x22xf32> to vector<16x16xf32>
    %286 = vector.broadcast %284 : f32 to vector<16x16xf32>
    %287 = arith.mulf %286, %285 : vector<16x16xf32>
    %288 = arith.addf %283, %287 : vector<16x16xf32>
    %c0_120 = arith.constant 0 : index
    %c26 = arith.constant 26 : index
    %289 = memref.load %arg1[%c0_120, %c26] : memref<2x49xf32, #tpu.memory_space<smem>>
    %290 = vector.extract_strided_slice %236 {offsets = [0, 5], sizes = [16, 16], strides = [1, 1]} : vector<16x22xf32> to vector<16x16xf32>
    %291 = vector.broadcast %289 : f32 to vector<16x16xf32>
    %292 = arith.mulf %291, %290 : vector<16x16xf32>
    %293 = arith.addf %288, %292 : vector<16x16xf32>
    %c1_121 = arith.constant 1 : index
    %c26_122 = arith.constant 26 : index
    %294 = memref.load %arg1[%c1_121, %c26_122] : memref<2x49xf32, #tpu.memory_space<smem>>
    %295 = vector.extract_strided_slice %238 {offsets = [0, 5], sizes = [16, 16], strides = [1, 1]} : vector<16x22xf32> to vector<16x16xf32>
    %296 = vector.broadcast %294 : f32 to vector<16x16xf32>
    %297 = arith.mulf %296, %295 : vector<16x16xf32>
    %298 = arith.addf %293, %297 : vector<16x16xf32>
    %c0_123 = arith.constant 0 : index
    %c27 = arith.constant 27 : index
    %299 = memref.load %arg1[%c0_123, %c27] : memref<2x49xf32, #tpu.memory_space<smem>>
    %300 = vector.extract_strided_slice %236 {offsets = [0, 6], sizes = [16, 16], strides = [1, 1]} : vector<16x22xf32> to vector<16x16xf32>
    %301 = vector.broadcast %299 : f32 to vector<16x16xf32>
    %302 = arith.mulf %301, %300 : vector<16x16xf32>
    %303 = arith.addf %298, %302 : vector<16x16xf32>
    %c1_124 = arith.constant 1 : index
    %c27_125 = arith.constant 27 : index
    %304 = memref.load %arg1[%c1_124, %c27_125] : memref<2x49xf32, #tpu.memory_space<smem>>
    %305 = vector.extract_strided_slice %238 {offsets = [0, 6], sizes = [16, 16], strides = [1, 1]} : vector<16x22xf32> to vector<16x16xf32>
    %306 = vector.broadcast %304 : f32 to vector<16x16xf32>
    %307 = arith.mulf %306, %305 : vector<16x16xf32>
    %308 = arith.addf %303, %307 : vector<16x16xf32>
    %c0_126 = arith.constant 0 : index
    %c4_127 = arith.constant 4 : index
    %c0_128 = arith.constant 0 : index
    %309 = vector.load %arg4[%c0_126, %c4_127, %c0_128] : memref<2x22x22xf32, #tpu.memory_space<vmem>>, vector<1x16x22xf32>
    %310 = vector.shape_cast %309 : vector<1x16x22xf32> to vector<16x22xf32>
    %c1_129 = arith.constant 1 : index
    %c4_130 = arith.constant 4 : index
    %c0_131 = arith.constant 0 : index
    %311 = vector.load %arg4[%c1_129, %c4_130, %c0_131] : memref<2x22x22xf32, #tpu.memory_space<vmem>>, vector<1x16x22xf32>
    %312 = vector.shape_cast %311 : vector<1x16x22xf32> to vector<16x22xf32>
    %c0_132 = arith.constant 0 : index
    %c28 = arith.constant 28 : index
    %313 = memref.load %arg1[%c0_132, %c28] : memref<2x49xf32, #tpu.memory_space<smem>>
    %314 = vector.extract_strided_slice %310 {offsets = [0, 0], sizes = [16, 16], strides = [1, 1]} : vector<16x22xf32> to vector<16x16xf32>
    %315 = vector.broadcast %313 : f32 to vector<16x16xf32>
    %316 = arith.mulf %315, %314 : vector<16x16xf32>
    %317 = arith.addf %308, %316 : vector<16x16xf32>
    %c1_133 = arith.constant 1 : index
    %c28_134 = arith.constant 28 : index
    %318 = memref.load %arg1[%c1_133, %c28_134] : memref<2x49xf32, #tpu.memory_space<smem>>
    %319 = vector.extract_strided_slice %312 {offsets = [0, 0], sizes = [16, 16], strides = [1, 1]} : vector<16x22xf32> to vector<16x16xf32>
    %320 = vector.broadcast %318 : f32 to vector<16x16xf32>
    %321 = arith.mulf %320, %319 : vector<16x16xf32>
    %322 = arith.addf %317, %321 : vector<16x16xf32>
    %c0_135 = arith.constant 0 : index
    %c29 = arith.constant 29 : index
    %323 = memref.load %arg1[%c0_135, %c29] : memref<2x49xf32, #tpu.memory_space<smem>>
    %324 = vector.extract_strided_slice %310 {offsets = [0, 1], sizes = [16, 16], strides = [1, 1]} : vector<16x22xf32> to vector<16x16xf32>
    %325 = vector.broadcast %323 : f32 to vector<16x16xf32>
    %326 = arith.mulf %325, %324 : vector<16x16xf32>
    %327 = arith.addf %322, %326 : vector<16x16xf32>
    %c1_136 = arith.constant 1 : index
    %c29_137 = arith.constant 29 : index
    %328 = memref.load %arg1[%c1_136, %c29_137] : memref<2x49xf32, #tpu.memory_space<smem>>
    %329 = vector.extract_strided_slice %312 {offsets = [0, 1], sizes = [16, 16], strides = [1, 1]} : vector<16x22xf32> to vector<16x16xf32>
    %330 = vector.broadcast %328 : f32 to vector<16x16xf32>
    %331 = arith.mulf %330, %329 : vector<16x16xf32>
    %332 = arith.addf %327, %331 : vector<16x16xf32>
    %c0_138 = arith.constant 0 : index
    %c30 = arith.constant 30 : index
    %333 = memref.load %arg1[%c0_138, %c30] : memref<2x49xf32, #tpu.memory_space<smem>>
    %334 = vector.extract_strided_slice %310 {offsets = [0, 2], sizes = [16, 16], strides = [1, 1]} : vector<16x22xf32> to vector<16x16xf32>
    %335 = vector.broadcast %333 : f32 to vector<16x16xf32>
    %336 = arith.mulf %335, %334 : vector<16x16xf32>
    %337 = arith.addf %332, %336 : vector<16x16xf32>
    %c1_139 = arith.constant 1 : index
    %c30_140 = arith.constant 30 : index
    %338 = memref.load %arg1[%c1_139, %c30_140] : memref<2x49xf32, #tpu.memory_space<smem>>
    %339 = vector.extract_strided_slice %312 {offsets = [0, 2], sizes = [16, 16], strides = [1, 1]} : vector<16x22xf32> to vector<16x16xf32>
    %340 = vector.broadcast %338 : f32 to vector<16x16xf32>
    %341 = arith.mulf %340, %339 : vector<16x16xf32>
    %342 = arith.addf %337, %341 : vector<16x16xf32>
    %c0_141 = arith.constant 0 : index
    %c31 = arith.constant 31 : index
    %343 = memref.load %arg1[%c0_141, %c31] : memref<2x49xf32, #tpu.memory_space<smem>>
    %344 = vector.extract_strided_slice %310 {offsets = [0, 3], sizes = [16, 16], strides = [1, 1]} : vector<16x22xf32> to vector<16x16xf32>
    %345 = vector.broadcast %343 : f32 to vector<16x16xf32>
    %346 = arith.mulf %345, %344 : vector<16x16xf32>
    %347 = arith.addf %342, %346 : vector<16x16xf32>
    %c1_142 = arith.constant 1 : index
    %c31_143 = arith.constant 31 : index
    %348 = memref.load %arg1[%c1_142, %c31_143] : memref<2x49xf32, #tpu.memory_space<smem>>
    %349 = vector.extract_strided_slice %312 {offsets = [0, 3], sizes = [16, 16], strides = [1, 1]} : vector<16x22xf32> to vector<16x16xf32>
    %350 = vector.broadcast %348 : f32 to vector<16x16xf32>
    %351 = arith.mulf %350, %349 : vector<16x16xf32>
    %352 = arith.addf %347, %351 : vector<16x16xf32>
    %c0_144 = arith.constant 0 : index
    %c32 = arith.constant 32 : index
    %353 = memref.load %arg1[%c0_144, %c32] : memref<2x49xf32, #tpu.memory_space<smem>>
    %354 = vector.extract_strided_slice %310 {offsets = [0, 4], sizes = [16, 16], strides = [1, 1]} : vector<16x22xf32> to vector<16x16xf32>
    %355 = vector.broadcast %353 : f32 to vector<16x16xf32>
    %356 = arith.mulf %355, %354 : vector<16x16xf32>
    %357 = arith.addf %352, %356 : vector<16x16xf32>
    %c1_145 = arith.constant 1 : index
    %c32_146 = arith.constant 32 : index
    %358 = memref.load %arg1[%c1_145, %c32_146] : memref<2x49xf32, #tpu.memory_space<smem>>
    %359 = vector.extract_strided_slice %312 {offsets = [0, 4], sizes = [16, 16], strides = [1, 1]} : vector<16x22xf32> to vector<16x16xf32>
    %360 = vector.broadcast %358 : f32 to vector<16x16xf32>
    %361 = arith.mulf %360, %359 : vector<16x16xf32>
    %362 = arith.addf %357, %361 : vector<16x16xf32>
    %c0_147 = arith.constant 0 : index
    %c33 = arith.constant 33 : index
    %363 = memref.load %arg1[%c0_147, %c33] : memref<2x49xf32, #tpu.memory_space<smem>>
    %364 = vector.extract_strided_slice %310 {offsets = [0, 5], sizes = [16, 16], strides = [1, 1]} : vector<16x22xf32> to vector<16x16xf32>
    %365 = vector.broadcast %363 : f32 to vector<16x16xf32>
    %366 = arith.mulf %365, %364 : vector<16x16xf32>
    %367 = arith.addf %362, %366 : vector<16x16xf32>
    %c1_148 = arith.constant 1 : index
    %c33_149 = arith.constant 33 : index
    %368 = memref.load %arg1[%c1_148, %c33_149] : memref<2x49xf32, #tpu.memory_space<smem>>
    %369 = vector.extract_strided_slice %312 {offsets = [0, 5], sizes = [16, 16], strides = [1, 1]} : vector<16x22xf32> to vector<16x16xf32>
    %370 = vector.broadcast %368 : f32 to vector<16x16xf32>
    %371 = arith.mulf %370, %369 : vector<16x16xf32>
    %372 = arith.addf %367, %371 : vector<16x16xf32>
    %c0_150 = arith.constant 0 : index
    %c34 = arith.constant 34 : index
    %373 = memref.load %arg1[%c0_150, %c34] : memref<2x49xf32, #tpu.memory_space<smem>>
    %374 = vector.extract_strided_slice %310 {offsets = [0, 6], sizes = [16, 16], strides = [1, 1]} : vector<16x22xf32> to vector<16x16xf32>
    %375 = vector.broadcast %373 : f32 to vector<16x16xf32>
    %376 = arith.mulf %375, %374 : vector<16x16xf32>
    %377 = arith.addf %372, %376 : vector<16x16xf32>
    %c1_151 = arith.constant 1 : index
    %c34_152 = arith.constant 34 : index
    %378 = memref.load %arg1[%c1_151, %c34_152] : memref<2x49xf32, #tpu.memory_space<smem>>
    %379 = vector.extract_strided_slice %312 {offsets = [0, 6], sizes = [16, 16], strides = [1, 1]} : vector<16x22xf32> to vector<16x16xf32>
    %380 = vector.broadcast %378 : f32 to vector<16x16xf32>
    %381 = arith.mulf %380, %379 : vector<16x16xf32>
    %382 = arith.addf %377, %381 : vector<16x16xf32>
    %c0_153 = arith.constant 0 : index
    %c5_154 = arith.constant 5 : index
    %c0_155 = arith.constant 0 : index
    %383 = vector.load %arg4[%c0_153, %c5_154, %c0_155] : memref<2x22x22xf32, #tpu.memory_space<vmem>>, vector<1x16x22xf32>
    %384 = vector.shape_cast %383 : vector<1x16x22xf32> to vector<16x22xf32>
    %c1_156 = arith.constant 1 : index
    %c5_157 = arith.constant 5 : index
    %c0_158 = arith.constant 0 : index
    %385 = vector.load %arg4[%c1_156, %c5_157, %c0_158] : memref<2x22x22xf32, #tpu.memory_space<vmem>>, vector<1x16x22xf32>
    %386 = vector.shape_cast %385 : vector<1x16x22xf32> to vector<16x22xf32>
    %c0_159 = arith.constant 0 : index
    %c35 = arith.constant 35 : index
    %387 = memref.load %arg1[%c0_159, %c35] : memref<2x49xf32, #tpu.memory_space<smem>>
    %388 = vector.extract_strided_slice %384 {offsets = [0, 0], sizes = [16, 16], strides = [1, 1]} : vector<16x22xf32> to vector<16x16xf32>
    %389 = vector.broadcast %387 : f32 to vector<16x16xf32>
    %390 = arith.mulf %389, %388 : vector<16x16xf32>
    %391 = arith.addf %382, %390 : vector<16x16xf32>
    %c1_160 = arith.constant 1 : index
    %c35_161 = arith.constant 35 : index
    %392 = memref.load %arg1[%c1_160, %c35_161] : memref<2x49xf32, #tpu.memory_space<smem>>
    %393 = vector.extract_strided_slice %386 {offsets = [0, 0], sizes = [16, 16], strides = [1, 1]} : vector<16x22xf32> to vector<16x16xf32>
    %394 = vector.broadcast %392 : f32 to vector<16x16xf32>
    %395 = arith.mulf %394, %393 : vector<16x16xf32>
    %396 = arith.addf %391, %395 : vector<16x16xf32>
    %c0_162 = arith.constant 0 : index
    %c36 = arith.constant 36 : index
    %397 = memref.load %arg1[%c0_162, %c36] : memref<2x49xf32, #tpu.memory_space<smem>>
    %398 = vector.extract_strided_slice %384 {offsets = [0, 1], sizes = [16, 16], strides = [1, 1]} : vector<16x22xf32> to vector<16x16xf32>
    %399 = vector.broadcast %397 : f32 to vector<16x16xf32>
    %400 = arith.mulf %399, %398 : vector<16x16xf32>
    %401 = arith.addf %396, %400 : vector<16x16xf32>
    %c1_163 = arith.constant 1 : index
    %c36_164 = arith.constant 36 : index
    %402 = memref.load %arg1[%c1_163, %c36_164] : memref<2x49xf32, #tpu.memory_space<smem>>
    %403 = vector.extract_strided_slice %386 {offsets = [0, 1], sizes = [16, 16], strides = [1, 1]} : vector<16x22xf32> to vector<16x16xf32>
    %404 = vector.broadcast %402 : f32 to vector<16x16xf32>
    %405 = arith.mulf %404, %403 : vector<16x16xf32>
    %406 = arith.addf %401, %405 : vector<16x16xf32>
    %c0_165 = arith.constant 0 : index
    %c37 = arith.constant 37 : index
    %407 = memref.load %arg1[%c0_165, %c37] : memref<2x49xf32, #tpu.memory_space<smem>>
    %408 = vector.extract_strided_slice %384 {offsets = [0, 2], sizes = [16, 16], strides = [1, 1]} : vector<16x22xf32> to vector<16x16xf32>
    %409 = vector.broadcast %407 : f32 to vector<16x16xf32>
    %410 = arith.mulf %409, %408 : vector<16x16xf32>
    %411 = arith.addf %406, %410 : vector<16x16xf32>
    %c1_166 = arith.constant 1 : index
    %c37_167 = arith.constant 37 : index
    %412 = memref.load %arg1[%c1_166, %c37_167] : memref<2x49xf32, #tpu.memory_space<smem>>
    %413 = vector.extract_strided_slice %386 {offsets = [0, 2], sizes = [16, 16], strides = [1, 1]} : vector<16x22xf32> to vector<16x16xf32>
    %414 = vector.broadcast %412 : f32 to vector<16x16xf32>
    %415 = arith.mulf %414, %413 : vector<16x16xf32>
    %416 = arith.addf %411, %415 : vector<16x16xf32>
    %c0_168 = arith.constant 0 : index
    %c38 = arith.constant 38 : index
    %417 = memref.load %arg1[%c0_168, %c38] : memref<2x49xf32, #tpu.memory_space<smem>>
    %418 = vector.extract_strided_slice %384 {offsets = [0, 3], sizes = [16, 16], strides = [1, 1]} : vector<16x22xf32> to vector<16x16xf32>
    %419 = vector.broadcast %417 : f32 to vector<16x16xf32>
    %420 = arith.mulf %419, %418 : vector<16x16xf32>
    %421 = arith.addf %416, %420 : vector<16x16xf32>
    %c1_169 = arith.constant 1 : index
    %c38_170 = arith.constant 38 : index
    %422 = memref.load %arg1[%c1_169, %c38_170] : memref<2x49xf32, #tpu.memory_space<smem>>
    %423 = vector.extract_strided_slice %386 {offsets = [0, 3], sizes = [16, 16], strides = [1, 1]} : vector<16x22xf32> to vector<16x16xf32>
    %424 = vector.broadcast %422 : f32 to vector<16x16xf32>
    %425 = arith.mulf %424, %423 : vector<16x16xf32>
    %426 = arith.addf %421, %425 : vector<16x16xf32>
    %c0_171 = arith.constant 0 : index
    %c39 = arith.constant 39 : index
    %427 = memref.load %arg1[%c0_171, %c39] : memref<2x49xf32, #tpu.memory_space<smem>>
    %428 = vector.extract_strided_slice %384 {offsets = [0, 4], sizes = [16, 16], strides = [1, 1]} : vector<16x22xf32> to vector<16x16xf32>
    %429 = vector.broadcast %427 : f32 to vector<16x16xf32>
    %430 = arith.mulf %429, %428 : vector<16x16xf32>
    %431 = arith.addf %426, %430 : vector<16x16xf32>
    %c1_172 = arith.constant 1 : index
    %c39_173 = arith.constant 39 : index
    %432 = memref.load %arg1[%c1_172, %c39_173] : memref<2x49xf32, #tpu.memory_space<smem>>
    %433 = vector.extract_strided_slice %386 {offsets = [0, 4], sizes = [16, 16], strides = [1, 1]} : vector<16x22xf32> to vector<16x16xf32>
    %434 = vector.broadcast %432 : f32 to vector<16x16xf32>
    %435 = arith.mulf %434, %433 : vector<16x16xf32>
    %436 = arith.addf %431, %435 : vector<16x16xf32>
    %c0_174 = arith.constant 0 : index
    %c40 = arith.constant 40 : index
    %437 = memref.load %arg1[%c0_174, %c40] : memref<2x49xf32, #tpu.memory_space<smem>>
    %438 = vector.extract_strided_slice %384 {offsets = [0, 5], sizes = [16, 16], strides = [1, 1]} : vector<16x22xf32> to vector<16x16xf32>
    %439 = vector.broadcast %437 : f32 to vector<16x16xf32>
    %440 = arith.mulf %439, %438 : vector<16x16xf32>
    %441 = arith.addf %436, %440 : vector<16x16xf32>
    %c1_175 = arith.constant 1 : index
    %c40_176 = arith.constant 40 : index
    %442 = memref.load %arg1[%c1_175, %c40_176] : memref<2x49xf32, #tpu.memory_space<smem>>
    %443 = vector.extract_strided_slice %386 {offsets = [0, 5], sizes = [16, 16], strides = [1, 1]} : vector<16x22xf32> to vector<16x16xf32>
    %444 = vector.broadcast %442 : f32 to vector<16x16xf32>
    %445 = arith.mulf %444, %443 : vector<16x16xf32>
    %446 = arith.addf %441, %445 : vector<16x16xf32>
    %c0_177 = arith.constant 0 : index
    %c41 = arith.constant 41 : index
    %447 = memref.load %arg1[%c0_177, %c41] : memref<2x49xf32, #tpu.memory_space<smem>>
    %448 = vector.extract_strided_slice %384 {offsets = [0, 6], sizes = [16, 16], strides = [1, 1]} : vector<16x22xf32> to vector<16x16xf32>
    %449 = vector.broadcast %447 : f32 to vector<16x16xf32>
    %450 = arith.mulf %449, %448 : vector<16x16xf32>
    %451 = arith.addf %446, %450 : vector<16x16xf32>
    %c1_178 = arith.constant 1 : index
    %c41_179 = arith.constant 41 : index
    %452 = memref.load %arg1[%c1_178, %c41_179] : memref<2x49xf32, #tpu.memory_space<smem>>
    %453 = vector.extract_strided_slice %386 {offsets = [0, 6], sizes = [16, 16], strides = [1, 1]} : vector<16x22xf32> to vector<16x16xf32>
    %454 = vector.broadcast %452 : f32 to vector<16x16xf32>
    %455 = arith.mulf %454, %453 : vector<16x16xf32>
    %456 = arith.addf %451, %455 : vector<16x16xf32>
    %c0_180 = arith.constant 0 : index
    %c6_181 = arith.constant 6 : index
    %c0_182 = arith.constant 0 : index
    %457 = vector.load %arg4[%c0_180, %c6_181, %c0_182] : memref<2x22x22xf32, #tpu.memory_space<vmem>>, vector<1x16x22xf32>
    %458 = vector.shape_cast %457 : vector<1x16x22xf32> to vector<16x22xf32>
    %c1_183 = arith.constant 1 : index
    %c6_184 = arith.constant 6 : index
    %c0_185 = arith.constant 0 : index
    %459 = vector.load %arg4[%c1_183, %c6_184, %c0_185] : memref<2x22x22xf32, #tpu.memory_space<vmem>>, vector<1x16x22xf32>
    %460 = vector.shape_cast %459 : vector<1x16x22xf32> to vector<16x22xf32>
    %c0_186 = arith.constant 0 : index
    %c42 = arith.constant 42 : index
    %461 = memref.load %arg1[%c0_186, %c42] : memref<2x49xf32, #tpu.memory_space<smem>>
    %462 = vector.extract_strided_slice %458 {offsets = [0, 0], sizes = [16, 16], strides = [1, 1]} : vector<16x22xf32> to vector<16x16xf32>
    %463 = vector.broadcast %461 : f32 to vector<16x16xf32>
    %464 = arith.mulf %463, %462 : vector<16x16xf32>
    %465 = arith.addf %456, %464 : vector<16x16xf32>
    %c1_187 = arith.constant 1 : index
    %c42_188 = arith.constant 42 : index
    %466 = memref.load %arg1[%c1_187, %c42_188] : memref<2x49xf32, #tpu.memory_space<smem>>
    %467 = vector.extract_strided_slice %460 {offsets = [0, 0], sizes = [16, 16], strides = [1, 1]} : vector<16x22xf32> to vector<16x16xf32>
    %468 = vector.broadcast %466 : f32 to vector<16x16xf32>
    %469 = arith.mulf %468, %467 : vector<16x16xf32>
    %470 = arith.addf %465, %469 : vector<16x16xf32>
    %c0_189 = arith.constant 0 : index
    %c43 = arith.constant 43 : index
    %471 = memref.load %arg1[%c0_189, %c43] : memref<2x49xf32, #tpu.memory_space<smem>>
    %472 = vector.extract_strided_slice %458 {offsets = [0, 1], sizes = [16, 16], strides = [1, 1]} : vector<16x22xf32> to vector<16x16xf32>
    %473 = vector.broadcast %471 : f32 to vector<16x16xf32>
    %474 = arith.mulf %473, %472 : vector<16x16xf32>
    %475 = arith.addf %470, %474 : vector<16x16xf32>
    %c1_190 = arith.constant 1 : index
    %c43_191 = arith.constant 43 : index
    %476 = memref.load %arg1[%c1_190, %c43_191] : memref<2x49xf32, #tpu.memory_space<smem>>
    %477 = vector.extract_strided_slice %460 {offsets = [0, 1], sizes = [16, 16], strides = [1, 1]} : vector<16x22xf32> to vector<16x16xf32>
    %478 = vector.broadcast %476 : f32 to vector<16x16xf32>
    %479 = arith.mulf %478, %477 : vector<16x16xf32>
    %480 = arith.addf %475, %479 : vector<16x16xf32>
    %c0_192 = arith.constant 0 : index
    %c44 = arith.constant 44 : index
    %481 = memref.load %arg1[%c0_192, %c44] : memref<2x49xf32, #tpu.memory_space<smem>>
    %482 = vector.extract_strided_slice %458 {offsets = [0, 2], sizes = [16, 16], strides = [1, 1]} : vector<16x22xf32> to vector<16x16xf32>
    %483 = vector.broadcast %481 : f32 to vector<16x16xf32>
    %484 = arith.mulf %483, %482 : vector<16x16xf32>
    %485 = arith.addf %480, %484 : vector<16x16xf32>
    %c1_193 = arith.constant 1 : index
    %c44_194 = arith.constant 44 : index
    %486 = memref.load %arg1[%c1_193, %c44_194] : memref<2x49xf32, #tpu.memory_space<smem>>
    %487 = vector.extract_strided_slice %460 {offsets = [0, 2], sizes = [16, 16], strides = [1, 1]} : vector<16x22xf32> to vector<16x16xf32>
    %488 = vector.broadcast %486 : f32 to vector<16x16xf32>
    %489 = arith.mulf %488, %487 : vector<16x16xf32>
    %490 = arith.addf %485, %489 : vector<16x16xf32>
    %c0_195 = arith.constant 0 : index
    %c45 = arith.constant 45 : index
    %491 = memref.load %arg1[%c0_195, %c45] : memref<2x49xf32, #tpu.memory_space<smem>>
    %492 = vector.extract_strided_slice %458 {offsets = [0, 3], sizes = [16, 16], strides = [1, 1]} : vector<16x22xf32> to vector<16x16xf32>
    %493 = vector.broadcast %491 : f32 to vector<16x16xf32>
    %494 = arith.mulf %493, %492 : vector<16x16xf32>
    %495 = arith.addf %490, %494 : vector<16x16xf32>
    %c1_196 = arith.constant 1 : index
    %c45_197 = arith.constant 45 : index
    %496 = memref.load %arg1[%c1_196, %c45_197] : memref<2x49xf32, #tpu.memory_space<smem>>
    %497 = vector.extract_strided_slice %460 {offsets = [0, 3], sizes = [16, 16], strides = [1, 1]} : vector<16x22xf32> to vector<16x16xf32>
    %498 = vector.broadcast %496 : f32 to vector<16x16xf32>
    %499 = arith.mulf %498, %497 : vector<16x16xf32>
    %500 = arith.addf %495, %499 : vector<16x16xf32>
    %c0_198 = arith.constant 0 : index
    %c46 = arith.constant 46 : index
    %501 = memref.load %arg1[%c0_198, %c46] : memref<2x49xf32, #tpu.memory_space<smem>>
    %502 = vector.extract_strided_slice %458 {offsets = [0, 4], sizes = [16, 16], strides = [1, 1]} : vector<16x22xf32> to vector<16x16xf32>
    %503 = vector.broadcast %501 : f32 to vector<16x16xf32>
    %504 = arith.mulf %503, %502 : vector<16x16xf32>
    %505 = arith.addf %500, %504 : vector<16x16xf32>
    %c1_199 = arith.constant 1 : index
    %c46_200 = arith.constant 46 : index
    %506 = memref.load %arg1[%c1_199, %c46_200] : memref<2x49xf32, #tpu.memory_space<smem>>
    %507 = vector.extract_strided_slice %460 {offsets = [0, 4], sizes = [16, 16], strides = [1, 1]} : vector<16x22xf32> to vector<16x16xf32>
    %508 = vector.broadcast %506 : f32 to vector<16x16xf32>
    %509 = arith.mulf %508, %507 : vector<16x16xf32>
    %510 = arith.addf %505, %509 : vector<16x16xf32>
    %c0_201 = arith.constant 0 : index
    %c47 = arith.constant 47 : index
    %511 = memref.load %arg1[%c0_201, %c47] : memref<2x49xf32, #tpu.memory_space<smem>>
    %512 = vector.extract_strided_slice %458 {offsets = [0, 5], sizes = [16, 16], strides = [1, 1]} : vector<16x22xf32> to vector<16x16xf32>
    %513 = vector.broadcast %511 : f32 to vector<16x16xf32>
    %514 = arith.mulf %513, %512 : vector<16x16xf32>
    %515 = arith.addf %510, %514 : vector<16x16xf32>
    %c1_202 = arith.constant 1 : index
    %c47_203 = arith.constant 47 : index
    %516 = memref.load %arg1[%c1_202, %c47_203] : memref<2x49xf32, #tpu.memory_space<smem>>
    %517 = vector.extract_strided_slice %460 {offsets = [0, 5], sizes = [16, 16], strides = [1, 1]} : vector<16x22xf32> to vector<16x16xf32>
    %518 = vector.broadcast %516 : f32 to vector<16x16xf32>
    %519 = arith.mulf %518, %517 : vector<16x16xf32>
    %520 = arith.addf %515, %519 : vector<16x16xf32>
    %c0_204 = arith.constant 0 : index
    %c48 = arith.constant 48 : index
    %521 = memref.load %arg1[%c0_204, %c48] : memref<2x49xf32, #tpu.memory_space<smem>>
    %522 = vector.extract_strided_slice %458 {offsets = [0, 6], sizes = [16, 16], strides = [1, 1]} : vector<16x22xf32> to vector<16x16xf32>
    %523 = vector.broadcast %521 : f32 to vector<16x16xf32>
    %524 = arith.mulf %523, %522 : vector<16x16xf32>
    %525 = arith.addf %520, %524 : vector<16x16xf32>
    %c1_205 = arith.constant 1 : index
    %c48_206 = arith.constant 48 : index
    %526 = memref.load %arg1[%c1_205, %c48_206] : memref<2x49xf32, #tpu.memory_space<smem>>
    %527 = vector.extract_strided_slice %460 {offsets = [0, 6], sizes = [16, 16], strides = [1, 1]} : vector<16x22xf32> to vector<16x16xf32>
    %528 = vector.broadcast %526 : f32 to vector<16x16xf32>
    %529 = arith.mulf %528, %527 : vector<16x16xf32>
    %530 = arith.addf %525, %529 : vector<16x16xf32>
    %531 = arith.negf %530 : vector<16x16xf32>
    %532 = math.exp %531 : vector<16x16xf32>
    %cst_207 = arith.constant 1.000000e+00 : f32
    %533 = vector.broadcast %cst_207 : f32 to vector<16x16xf32>
    %534 = arith.addf %533, %532 : vector<16x16xf32>
    %535 = arith.divf %533, %534 : vector<16x16xf32>
    %c0_208 = arith.constant 0 : index
    %c0_209 = arith.constant 0 : index
    %c0_210 = arith.constant 0 : index
    %536 = vector.load %arg3[%c0_208, %c0_209, %c0_210] : memref<1x16x16xf32, #tpu.memory_space<vmem>>, vector<1x16x16xf32>
    %537 = vector.shape_cast %536 : vector<1x16x16xf32> to vector<16x16xf32>
    %538 = vector.shape_cast %535 : vector<16x16xf32> to vector<1x16x16xf32>
    tpu.vector_store %arg3[%c0_208, %c0_209, %c0_210], %538 {strides = array<i32>} : memref<1x16x16xf32, #tpu.memory_space<vmem>>, vector<1x16x16xf32>,
    return
  }
  func.func @transform_0(%arg0: i32) -> (i32, i32) {
    %c0_i32 = arith.constant 0 : i32
    %c0_i32_0 = arith.constant 0 : i32
    %c0_i32_1 = arith.constant 0 : i32
    return %c0_i32, %c0_i32_0 : i32, i32
  }
  func.func @transform_1(%arg0: i32) -> (i32, i32, i32, i32) {
    %c0_i32 = arith.constant 0 : i32
    %c0_i32_0 = arith.constant 0 : i32
    %c0_i32_1 = arith.constant 0 : i32
    %c0_i32_2 = arith.constant 0 : i32
    return %arg0, %c0_i32, %c0_i32_0, %c0_i32_1 : i32, i32, i32, i32
  }
  func.func @transform_2(%arg0: i32) -> (i32, i32, i32) {
    %c0_i32 = arith.constant 0 : i32
    %c0_i32_0 = arith.constant 0 : i32
    %c0_i32_1 = arith.constant 0 : i32
    return %arg0, %c0_i32, %c0_i32_0 : i32, i32, i32
  }
}

</mosaic_0001>

<bundles_post_ra>
// kernel: spatial_attention.3
= control target key start
LH: loop header
LB: loop body
LE: loop exit
PB: predicated region body
PF: predicated region fallthrough
CT: control target
= control target key end

     0   :  { %s394_s6 = smov 0   ;;  %s396_s7 = smov 0   ;;  %s431_s0 = inlined_call_operand.vmem [shape: f32[2,4,256], index: 0, kind: input, shape index: {}]   ;;  %s432_s1 = inlined_call_operand.vmem [shape: f32[2,2,256], index: 1, kind: output, shape index: {}]  }
   0x1   :  { %s398_s8 = smov 0  }
   0x2 LB: > { %s23_s9 = sadd.s32 1, %s377_s7  ;;  %p323_p0 = scmp.ge.s32.totalorder %s381_s8, 1  ;;  %s381_s8 = sphi %s398_s8, %s11_s8   ;;  %s377_s7 = sphi %s396_s7, %s434_s7   ;;  %s373_s6 = sphi %s394_s6, %s433_s6  }
   0x3   : > { %p25_p1 = scmp.ge.s32.totalorder %s23_s9, 2  ;;  %p108_p2 = scmp.lt.s32.totalorder %s381_s8, 3 }
   0x5   : > { %s436_s9 = smov (%p25_p1, %s23_s9), 0  ;;  %p109_p3 = pnand %p323_p0, %p108_p2 }
   0x6   : > { %p137_p4 = scmp.lt.s32.totalorder (!%p109_p3), %s373_s6, 1  ;;  %vm160_vm0 = vcmask (!%p109_p3), 1043456   ;;  %v383_v12 = vmov (!%p109_p3), 1966171168   ;;  %v181_v14 = vlaneseq (!%p109_p3) }
   0x7   : > { %112 = sbr.rel (%p109_p3) target bundleno = 40 (0x28), region = 24  ;;  %v179_v13 = vunpack.c.l.s4 (!%p109_p3), %v383_v12 }
   0x8   : > { %v182_v24 = vshrl.u32 (!%p109_p3), %v181_v14, 7  ;;  %vm195_vm1 = vcmp.lt.s32.totalorder (!%p109_p3), %v181_v14, 256 }
   0x9   : > { %v180_v23 = vunpack.c.0.s8 (!%p109_p3), %v179_v13 }
   0xb   : > { %v183_v34 = vsub.s32 (!%p109_p3), %v180_v23, %v182_v24 }
   0xe   : > { %s438_s6 = smov (!%p137_p4, %s373_s6), 1 }
   0xf   : > { %s331_s10 = sshll.u32 %s438_s6, 3  ;;  %s332_s14 = sshll.u32 %s438_s6, 2 }
  0x10   : > { %s144_s13 = scalar_lea.vmem %s431_s0, %s331_s10  ;;  %s154_s17 = scalar_lea.vmem %s432_s1, %s332_s14 }
  0x11   : > { %v156_v0 = vld [vmem:[%s144_s13] sm:$0xff] }
  0x12   : > { %v158_v1 = vcombine.high %v156_v0, %v156_v0  ;;  %v161_v2 = vsel %vm160_vm0, %v156_v0, 0.0  ;;  %v198_v3 = vsel %vm160_vm0, %v156_v0, -inf }
  0x13   : > { %v162_v4 = vrot.slane %v161_v2, 4  ;;  %v199_v5 = vrot.slane %v198_v3, 4 }
  0x14   : > { %v168_v6 = vsel %vm160_vm0, %v158_v1, 0.0  ;;  %v205_v7 = vsel %vm160_vm0, %v158_v1, -inf }
  0x15   : > { %v163_v8 = vadd.f32 %v162_v4, %v161_v2  ;;  %v169_v9 = vrot.slane %v168_v6, 4  ;;  %v200_v10 = vmax.f32 %v198_v3, %v199_v5  ;;  %v206_v11 = vrot.slane %v205_v7, 4 }
  0x17   : > { %v164_v15 = vrot.slane %v163_v8, 2  ;;  %v170_v16 = vadd.f32 %v169_v9, %v168_v6  ;;  %v201_v17 = vrot.slane %v200_v10, 2  ;;  %v207_v18 = vmax.f32 %v205_v7, %v206_v11 }
  0x19   : > { %v165_v19 = vadd.f32 %v164_v15, %v163_v8  ;;  %v171_v20 = vrot.slane %v170_v16, 2  ;;  %v202_v21 = vmax.f32 %v200_v10, %v201_v17  ;;  %v208_v22 = vrot.slane %v207_v18, 2 }
  0x1b   : > { %v166_v25 = vrot.slane %v165_v19, 1  ;;  %v172_v26 = vadd.f32 %v171_v20, %v170_v16  ;;  %v203_v27 = vrot.slane %v202_v21, 1  ;;  %v209_v28 = vmax.f32 %v207_v18, %v208_v22 }
  0x1d   : > { %v167_v29 = vadd.f32 %v166_v25, %v165_v19  ;;  %v173_v30 = vrot.slane %v172_v26, 1  ;;  %v204_v31 = vmax.f32 %v202_v21, %v203_v27  ;;  %v210_v32 = vrot.slane %v209_v28, 1 }
  0x1f   : > { %v174_v33 = vadd.f32 %v173_v30, %v172_v26  ;;  %v211_v35 = vmax.f32 %v209_v28, %v210_v32 }
  0x21   : > { %v177_v36 = vcombine.low %v167_v29, %v174_v33  ;;  %v214_v37 = vcombine.low %v204_v31, %v211_v35 }
  0x23   : > { %v184_v38 = vrot.slane %v177_v36, %v183_v34  ;;  %v221_v39 = vrot.slane %v214_v37, %v183_v34 }
  0x25   : > { %v191_v40 = vrot.slane %v184_v38, %v183_v34  ;;  %v228_v41 = vrot.slane %v221_v39, %v183_v34 }
  0x27   : > { %197 = vst.msk [vmem:[%s154_s17] ss:$2 sm:$0x3] %vm195_vm1, %v191_v40  ;;  %328 = vst.msk [vmem:[%s154_s17 + $0x1] ss:$2 sm:$0x3] %vm195_vm1, %v228_v41 }
  0x28 PF: > { %s11_s8 = sadd.s32 1, %s381_s8   ;;  %s433_s6 = smov %s377_s7 }
  0x29   : > { %p8_p5 = scmp.ge.s32.totalorder %s11_s8, 4   ;;  %s434_s7 = smov %s436_s9 }
  0x2b   :  { %10 = sbr.rel (!%p8_p5) target bundleno = 2 (0x2), region = 55 }

// kernel: spatial_attention.5
= control target key start
LH: loop header
LB: loop body
LE: loop exit
PB: predicated region body
PF: predicated region fallthrough
CT: control target
= control target key end

     0   :  { %s410_s9 = smov 0   ;;  %s412_s10 = smov 0   ;;  %s443_s0 = inlined_call_operand.vmem [shape: f32[2,4,256], index: 0, kind: input, shape index: {}]   ;;  %s444_s1 = inlined_call_operand.vmem [shape: f32[2,1,256], index: 1, kind: input, shape index: {}]   ;;  %s445_s2 = inlined_call_operand.vmem [shape: f32[2,4,256], index: 2, kind: output, shape index: {}]  }
   0x1   :  { %s414_s11 = smov 0  }
   0x2 LB: > { %s24_s12 = sadd.s32 1, %s389_s10  ;;  %p337_p0 = scmp.ge.s32.totalorder %s393_s11, 1  ;;  %s393_s11 = sphi %s414_s11, %s12_s11   ;;  %s389_s10 = sphi %s412_s10, %s447_s10   ;;  %s385_s9 = sphi %s410_s9, %s446_s9  }
   0x3   : > { %p26_p1 = scmp.ge.s32.totalorder %s24_s12, 2  ;;  %p149_p2 = scmp.lt.s32.totalorder %s393_s11, 3 }
   0x5   : > { %s449_s12 = smov (%p26_p1, %s24_s12), 0  ;;  %p150_p3 = pnand %p337_p0, %p149_p2 }
   0x6   : > { %p188_p4 = scmp.lt.s32.totalorder (!%p150_p3), %s385_s9, 1  ;;  %v219_v0 = vlaneseq (!%p150_p3) }
   0x7   : > { %153 = sbr.rel (%p150_p3) target bundleno = 25 (0x19), region = 28 }
   0x8   : > { %v220_v1 = vshrl.u32 (!%p150_p3), %v219_v0, 7 }
   0xa   : > { %v221_v2 = vsub.s32 (!%p150_p3), 0, %v220_v1  ;;  %v225_v3 = vsub.s32 (!%p150_p3), 1, %v220_v1 }
   0xe   : > { %s451_s9 = smov (!%p188_p4, %s385_s9), 1 }
   0xf   : > { %s345_s13 = sshll.u32 %s451_s9, 3  ;;  %s340_s14 = sshll.u32 %s451_s9, 1 }
  0x10   : > { %s195_s17 = scalar_lea.vmem %s443_s0, %s345_s13  ;;  %s204_s20 = scalar_lea.vmem %s444_s1, %s340_s14 }
  0x11   : > { %v216_v4 = vld [vmem:[%s204_s20] sm:$0x3]  ;;  %s214_s23 = scalar_lea.vmem %s445_s2, %s345_s13 }
  0x12   : > { %v222_v5 = vrot.slane %v216_v4, %v221_v2  ;;  %v226_v6 = vrot.slane %v216_v4, %v225_v3  ;;  %v217_v7 = vld [vmem:[%s195_s17] sm:$0xff] }
  0x14   : > { %v227_v8 = vcombine.low %v222_v5, %v226_v6 }
  0x16   : > { %v229_v9 = vmul.f32 %v227_v8, %v217_v7 }
  0x18   : > { %230 = vst [vmem:[%s214_s23] sm:$0xff] %v229_v9 }
  0x19 PF: > { %s12_s11 = sadd.s32 1, %s393_s11   ;;  %s446_s9 = smov %s389_s10 }
  0x1a   : > { %p9_p5 = scmp.ge.s32.totalorder %s12_s11, 4   ;;  %s447_s10 = smov %s449_s12 }
  0x1c   :  { %11 = sbr.rel (!%p9_p5) target bundleno = 2 (0x2), region = 61 }

// kernel: spatial_attention.4
= control target key start
LH: loop header
LB: loop body
LE: loop exit
PB: predicated region body
PF: predicated region fallthrough
CT: control target
= control target key end

     0   :  { %7 = vsyncpa [#allocation4], 0  ;;  %s1765_s9 = smov 0   ;;  %s2393_s0 = inlined_call_operand.vmem [shape: f32[2,49], index: 0, kind: input, shape index: {}]   ;;  %s2394_s1 = inlined_call_operand.vmem [shape: f32[2,2,16,16], index: 1, kind: input, shape index: {}]   ;;  %s2395_s2 = inlined_call_operand.vmem [shape: f32[2,16,16], index: 2, kind: output, shape index: {}]  }
   0x1 LB: > { %s1771_s10 = sadd.s32 4294967295, %s1739_s9   ;;  %p1565_p0 = scmp.ge.s32.totalorder %s1739_s9, 1  ;;  %s1739_s9 = sphi %s1765_s9, %s13_s9  }
   0x2   : > { %p91_p1 = scmp.lt.s32.totalorder %s1739_s9, 3  ;;  %s104_s13 = sshll.u32 %s2393_s0, 4  ;;  %s105_s13 = int_to_ptr.vmem [resolvable:$true] %s104_s13 }
   0x3   : > { %p1687_p3 = scmp.eq.s32.totalorder %s1771_s10, 0  ;;  %s1714_s15 = scalar_lea.vmem %s105_s13, 32 }
   0x4   : > { %p1778_p2 = pnand %p1565_p0, %p91_p1  ;;  %p1715_p6 = scmp.ne.s32.totalorder %s105_s13, %s1714_s15 }
   0x5   : > { %p1722_p10 = scmp.lt.s32.totalorder %s105_s13, %s105_s13  ;;  %p1723_p11 = scmp.lt.s32.totalorder %s1714_s15, %s1714_s15 }
   0x6   : > { %p1683_p4 = pneg %p1778_p2 }
   0x7   : > { %p1724_p12 = por %p1723_p11, %p1722_p10 }
   0x8   : > { %p1684_p5 = pnand %p1687_p3, %p1683_p4 }
   0xa   : > { %p1716_p7 = pneg %p1684_p5 }
   0xc   : > { %p1717_p8 = pnand %p1716_p7, %p1715_p6 }
   0xe   : > { %p1718_p9 = pneg %p1717_p8 }
  0x10   : > { %p1725_p13 = pnand %p1724_p12, %p1718_p9 }
  0x12   : > { %1728 = shalt.err (!%p1725_p13)
}
  0x13   : > { %s1741_s16 = smov [#allocation3]   ;;  %125 = sbr.rel (%p1778_p2) target bundleno = 640 (0x280), region = 28 }
  0x14   : > { %1686 = dma.vmem_to_smem (!%p1684_p5), %s105_s13, 32, %s1741_s16, [#allocation4]  }
  0x1a   : > { %1734 = dma.done.wait (%p1687_p3), [#allocation4], 32  }
  0x1b   : > { %1736 = vsyncadd (%p1687_p3), [#allocation4], 4294967264 }
  0x1c   : > { %131 = sfence }
  0x1d   : > { %p148_p0 = scmp.lt.s32.totalorder %s1771_s10, 1  ;;  %vm158_vm0 = vcmask 179200   ;;  %vm161_vm1 = vcmask 177152   ;;  %v1742_v0 = vmov 0.0   ;;  %s1743_s21 = smov 3   ;;  %vm176_vm2 = vcmask 154648  }
  0x1e   : > { %163 = vst.msk [vmem:[#allocation2 + $0x18] sm:$0xff] %vm158_vm0, %v1742_v0  ;;  %164 = vst.msk [vmem:[#allocation2 + $0x20] sm:$0xff] %vm158_vm0, %v1742_v0  ;;  %s1576_s22 = sld [smem:[#allocation3 + $0x80]]  ;;  %s1577_s24 = sld [smem:[#allocation3 + $0x1]]  ;;  %vm1493_vm3 = vcmask 130048  }
  0x1f   : > { %159 = vst.msk [vmem:[#allocation2] sm:$0xff] %vm158_vm0, %v1742_v0  ;;  %160 = vst.msk [vmem:[#allocation2 + $0x8] sm:$0xff] %vm158_vm0, %v1742_v0  ;;  %s2398_s10 = smov (!%p148_p0, %s1771_s10), 1  ;;  %s197_s23 = sld [smem:[#allocation3]] }
  0x20   : > { %165 = vst.msk [vmem:[#allocation2 + $0x28] sm:$0x3f] %vm161_vm1, %v1742_v0  ;;  %162 = vst.msk [vmem:[#allocation2 + $0x10] sm:$0x3f] %vm161_vm1, %v1742_v0  ;;  %s1677_s17 = sshll.u32 %s2398_s10, 5  ;;  %s1801_s25 = sld [smem:[#allocation3 + $0x81]] }
  0x21   : > { %s152_s20 = scalar_lea.vmem %s2394_s1, %s1677_s17  ;;  %s1579_s26 = sld [smem:[#allocation3 + $0x2]] }
  0x22   : > { %v1574_v1 = vld [vmem:[%s152_s20 + $0x10] sm:$0xff]  ;;  %v166_v2 = vld [vmem:[%s152_s20] sm:$0xff]  ;;  %v1575_v3 = vld [vmem:[%s152_s20 + $0x18] sm:$0xff]  ;;  %s1580_s27 = sld [smem:[#allocation3 + $0x82]]  ;;  %s1744_s28 = smov 127  }
  0x23   : > { %184 = vrot.lane.b32.xlu1 %v1574_v1, %s1743_s21  ;;  %170 = vrot.lane.b32.xlu0 %v166_v2, %s1743_s21  ;;  %v167_v4 = vld [vmem:[%s152_s20 + $0x8] sm:$0xff]  ;;  %s1581_s29 = sld [smem:[#allocation3 + $0x3]]  ;;  %s1745_s3 = smov 126  }
  0x24   : > { %v204_v9 = vstv %s1576_s22  ;;  %v210_v11 = vstv %s1577_s24  ;;  %s1582_s30 = sld [smem:[#allocation3 + $0x83]]  ;;  %s1583_s4 = sld [smem:[#allocation3 + $0x4]] }
  0x25   : > { %v198_v10 = vstv %s197_s23  ;;  %s1584_s5 = sld [smem:[#allocation3 + $0x84]]  ;;  %s1746_s6 = smov 125  }
  0x26   : > { %v224_v15 = vstv %s1801_s25  ;;  %s1585_s7 = sld [smem:[#allocation3 + $0x5]]  ;;  %s1747_s11 = smov 124  }
  0x27   : > { %186 = vrot.lane.b32.xlu1 %v1575_v3, %s1743_s21  ;;  %172 = vrot.lane.b32.xlu0 %v167_v4, %s1743_s21  ;;  %v238_v25 = vstv %s1579_s26  ;;  %s1586_s8 = sld [smem:[#allocation3 + $0x85]]  ;;  %s1587_s12 = sld [smem:[#allocation3 + $0x6]] }
  0x28   : > { %v252_v29 = vstv %s1580_s27  ;;  %s1588_s13 = sld [smem:[#allocation3 + $0x86]]  ;;  %s1748_s14 = smov 123  }
  0x29   : > { %v266_v32 = vstv %s1581_s29  ;;  %s1591_s15 = sld [smem:[#allocation3 + $0x8]]  ;;  %s1749_s17 = smov 122  }
  0x2a   : > { %v280_v35 = vstv %s1582_s30  ;;  %v294_v38 = vstv %s1583_s4  ;;  %s1592_s16 = sld [smem:[#allocation3 + $0x88]]  ;;  %s1593_s18 = sld [smem:[#allocation3 + $0x9]] }
  0x2b   : > { %v308_v41 = vstv %s1584_s5  ;;  %s1594_s19 = sld [smem:[#allocation3 + $0x89]]  ;;  %s1595_s20 = sld [smem:[#allocation3 + $0xa]] }
  0x2c   : > { %v322_v44 = vstv %s1585_s7  ;;  %s1596_s21 = sld [smem:[#allocation3 + $0x8a]]  ;;  %s1597_s22 = sld [smem:[#allocation3 + $0xb]] }
  0x2d   : > { %v336_v47 = vstv %s1586_s8  ;;  %v350_v50 = vstv %s1587_s12  ;;  %s1598_s23 = sld [smem:[#allocation3 + $0x8b]]  ;;  %s1599_s24 = sld [smem:[#allocation3 + $0xc]] }
  0x2e   : > { %v364_v53 = vstv %s1588_s13  ;;  %s1600_s25 = sld [smem:[#allocation3 + $0x8c]]  ;;  %s1601_s26 = sld [smem:[#allocation3 + $0xd]] }
  0x2f   : > { %v394_v57 = vstv %s1591_s15  ;;  %s1602_s27 = sld [smem:[#allocation3 + $0x8d]]  ;;  %s1605_s29 = sld [smem:[#allocation3 + $0xf]] }
  0x30   : > { %v408_v62 = vstv %s1592_s16  ;;  %v422_v2 = vstv %s1593_s18  ;;  %s1606_s30 = sld [smem:[#allocation3 + $0x8f]]  ;;  %s1607_s4 = sld [smem:[#allocation3 + $0x10]] }
  0x31   : > { %s1608_s5 = sld [smem:[#allocation3 + $0x90]]  ;;  %s1609_s7 = sld [smem:[#allocation3 + $0x11]] }
  0x32   : > { %s1610_s8 = sld [smem:[#allocation3 + $0x91]]  ;;  %s1611_s12 = sld [smem:[#allocation3 + $0x12]] }
  0x33   : > { %s1612_s13 = sld [smem:[#allocation3 + $0x92]]  ;;  %s1613_s15 = sld [smem:[#allocation3 + $0x13]] }
  0x34   : > { %s1614_s16 = sld [smem:[#allocation3 + $0x93]]  ;;  %s1960_s18 = sld [smem:[#allocation3 + $0x14]] }
  0x95   : > { %v185_v5 = vpop.permute.xlu1 %184  ;;  %v171_v6 = vpop.permute.xlu0 %170 }
  0x96   : > { %191 = vst.msk [vmem:[#allocation2 + $0x1b] sm:$0xff] %vm176_vm2, %v185_v5  ;;  %177 = vst.msk [vmem:[#allocation2 + $0x3] sm:$0xff] %vm176_vm2, %v171_v6  ;;  %v436_v5 = vstv %s1594_s19  ;;  %s1966_s19 = sld [smem:[#allocation3 + $0x94]] }
  0x99   : > { %v187_v7 = vpop.permute.xlu1 %186  ;;  %v173_v8 = vpop.permute.xlu0 %172 }
  0x9a   : > { %192 = vst.msk [vmem:[#allocation2 + $0x23] sm:$0xff] %vm176_vm2, %v187_v7  ;;  %178 = vst.msk [vmem:[#allocation2 + $0xb] sm:$0xff] %vm176_vm2, %v173_v8  ;;  %v450_v8 = vstv %s1595_s20  ;;  %s1973_s20 = sld [smem:[#allocation3 + $0x16]] }
  0x9d   : > { %v1803_v12 = vld [vmem:[#allocation2 + $0x18] sm:$0xff]  ;;  %v1806_v14 = vld [vmem:[#allocation2] sm:$0xff] }
  0x9e   : > { %v205_v13 = vmul.f32 %v204_v9, %v1803_v12  ;;  %v199_v16 = vmul.f32 %v198_v10, %v1806_v14  ;;  %v211_v17 = vmul.f32 %v210_v11, %v1806_v14  ;;  %v225_v20 = vmul.f32 %v224_v15, %v1803_v12  ;;  %v1864_v56 = vld [vmem:[#allocation2 + $0x1] sm:$0xff]  ;;  %v1870_v60 = vld [vmem:[#allocation2 + $0x19] sm:$0xff] }
  0x9f   : > { %v239_v27 = vmul.f32 %v238_v25, %v1806_v14  ;;  %v253_v30 = vmul.f32 %v252_v29, %v1803_v12  ;;  %v267_v33 = vmul.f32 %v266_v32, %v1806_v14  ;;  %v281_v36 = vmul.f32 %v280_v35, %v1803_v12 }
  0xa0   : > { %v1811_v18 = vadd.f32 %v205_v13, %v199_v16  ;;  %215 = vrot.lane.b32.xlu0 %v211_v17, %s1744_s28  ;;  %v295_v39 = vmul.f32 %v294_v38, %v1806_v14  ;;  %v309_v42 = vmul.f32 %v308_v41, %v1803_v12  ;;  %v323_v45 = vmul.f32 %v322_v44, %v1806_v14 }
  0xa1   : > { %v1813_v19 = vld [vmem:[#allocation2 + $0x20] sm:$0xff]  ;;  %v1818_v22 = vld [vmem:[#allocation2 + $0x8] sm:$0xff]  ;;  %v337_v48 = vmul.f32 %v336_v47, %v1803_v12  ;;  %v351_v51 = vmul.f32 %v350_v50, %v1806_v14  ;;  %v365_v54 = vmul.f32 %v364_v53, %v1803_v12  ;;  %v395_v58 = vmul.f32 %v394_v57, %v1864_v56 }
  0xa2   : > { %v206_v21 = vmul.f32 %v204_v9, %v1813_v19  ;;  %v200_v23 = vmul.f32 %v198_v10, %v1818_v22  ;;  %v212_v24 = vmul.f32 %v210_v11, %v1818_v22  ;;  %v226_v28 = vmul.f32 %v224_v15, %v1813_v19  ;;  %v1872_v61 = vld [vmem:[#allocation2 + $0x9] sm:$0xff]  ;;  %v1878_v1 = vld [vmem:[#allocation2 + $0x21] sm:$0xff] }
  0xa3   : > { %v240_v31 = vmul.f32 %v238_v25, %v1818_v22  ;;  %v254_v34 = vmul.f32 %v252_v29, %v1813_v19  ;;  %v268_v37 = vmul.f32 %v266_v32, %v1818_v22  ;;  %v282_v40 = vmul.f32 %v280_v35, %v1813_v19 }
  0xa4   : > { %v1822_v26 = vadd.f32 %v206_v21, %v200_v23  ;;  %229 = vrot.lane.b32.xlu0 %v225_v20, %s1744_s28  ;;  %217 = vrot.lane.b32.xlu1 %v212_v24, %s1744_s28  ;;  %v296_v43 = vmul.f32 %v294_v38, %v1818_v22  ;;  %v310_v46 = vmul.f32 %v308_v41, %v1813_v19  ;;  %v464_v11 = vstv %s1596_s21  ;;  %v1926_v38 = vld [vmem:[#allocation2 + $0x1a] sm:$0xff]  ;;  %s1980_s21 = sld [smem:[#allocation3 + $0x96]] }
  0xa5   : > { %v324_v49 = vmul.f32 %v322_v44, %v1818_v22  ;;  %v338_v52 = vmul.f32 %v336_v47, %v1813_v19  ;;  %v352_v55 = vmul.f32 %v350_v50, %v1818_v22  ;;  %v366_v59 = vmul.f32 %v364_v53, %v1813_v19 }
  0xa6   : > { %v409_v63 = vmul.f32 %v408_v62, %v1870_v60  ;;  %v396_v0 = vmul.f32 %v394_v57, %v1872_v61  ;;  %v423_v3 = vmul.f32 %v422_v2, %v1864_v56  ;;  %v410_v4 = vmul.f32 %v408_v62, %v1878_v1 }
  0xa7   : > { %v437_v6 = vmul.f32 %v436_v5, %v1870_v60  ;;  %v424_v7 = vmul.f32 %v422_v2, %v1872_v61  ;;  %v451_v9 = vmul.f32 %v450_v8, %v1864_v56  ;;  %v438_v10 = vmul.f32 %v436_v5, %v1878_v1 }
  0xa8   : > { %243 = vrot.lane.b32.xlu0 %v239_v27, %s1745_s3  ;;  %231 = vrot.lane.b32.xlu1 %v226_v28, %s1744_s28  ;;  %v465_v12 = vmul.f32 %v464_v11, %v1870_v60  ;;  %v452_v13 = vmul.f32 %v450_v8, %v1872_v61  ;;  %v478_v14 = vstv %s1597_s22  ;;  %v466_v16 = vmul.f32 %v464_v11, %v1878_v1  ;;  %s1990_s22 = sld [smem:[#allocation3 + $0x17]] }
  0xa9   : > { %v479_v15 = vmul.f32 %v478_v14, %v1864_v56  ;;  %v492_v17 = vstv %s1598_s23  ;;  %v480_v20 = vmul.f32 %v478_v14, %v1872_v61  ;;  %v506_v21 = vstv %s1599_s24  ;;  %s2002_s23 = sld [smem:[#allocation3 + $0x97]]  ;;  %s2011_s24 = sld [smem:[#allocation3 + $0x18]] }
  0xaa   : > { %v493_v19 = vmul.f32 %v492_v17, %v1870_v60  ;;  %v507_v22 = vmul.f32 %v506_v21, %v1864_v56  ;;  %v494_v23 = vmul.f32 %v492_v17, %v1878_v1  ;;  %v520_v24 = vstv %s1600_s25  ;;  %s2013_s25 = sld [smem:[#allocation3 + $0x7]] }
  0xab   : > { %v521_v25 = vmul.f32 %v520_v24, %v1870_v60  ;;  %v508_v27 = vmul.f32 %v506_v21, %v1872_v61  ;;  %v534_v28 = vstv %s1601_s26  ;;  %v578_v35 = vstv %s1605_s29  ;;  %s2017_s26 = sld [smem:[#allocation3 + $0x87]]  ;;  %s2029_s29 = sld [smem:[#allocation3 + $0x19]] }
  0xac   : > { %257 = vrot.lane.b32.xlu0 %v253_v30, %s1745_s3  ;;  %245 = vrot.lane.b32.xlu1 %v240_v31, %s1745_s3  ;;  %v535_v29 = vmul.f32 %v534_v28, %v1864_v56  ;;  %v522_v30 = vmul.f32 %v520_v24, %v1878_v1  ;;  %v548_v31 = vstv %s1602_s27  ;;  %v606_v44 = vstv %s1607_s4  ;;  %s2022_s27 = sld [smem:[#allocation3 + $0x98]]  ;;  %s2048_s4 = sld [smem:[#allocation3 + $0x1a]] }
  0xad   : > { %v549_v32 = vmul.f32 %v548_v31, %v1870_v60  ;;  %v620_v47 = vstv %s1608_s5  ;;  %v634_v50 = vstv %s1609_s7  ;;  %v648_v53 = vstv %s1610_s8  ;;  %s1628_s5 = sld [smem:[#allocation3 + $0x9a]]  ;;  %s2061_s7 = sld [smem:[#allocation3 + $0x1b]] }
  0xae   : > { %v676_v2 = vstv %s1612_s13  ;;  %v718_v17 = vstv %s1960_s18  ;;  %s2067_s8 = sld [smem:[#allocation3 + $0x9b]]  ;;  %s2081_s13 = sld [smem:[#allocation3 + $0x9d]] }
  0xaf   : > { %v677_v5 = vmul.f32 %v676_v2, %v1926_v38  ;;  %s2110_s18 = sld [smem:[#allocation3 + $0x1f]] }
  0xb0   : > { %271 = vrot.lane.b32.xlu0 %v267_v33, %s1746_s6  ;;  %259 = vrot.lane.b32.xlu1 %v254_v34, %s1745_s3  ;;  %v536_v33 = vmul.f32 %v534_v28, %v1872_v61  ;;  %v1920_v34 = vld [vmem:[#allocation2 + $0x2] sm:$0xff] }
  0xb1   : > { %v719_v21 = vmul.f32 %v718_v17, %v1920_v34 }
  0xb4   : > { %285 = vrot.lane.b32.xlu0 %v281_v36, %s1746_s6  ;;  %273 = vrot.lane.b32.xlu1 %v268_v37, %s1746_s6  ;;  %v579_v36 = vmul.f32 %v578_v35, %v1920_v34  ;;  %v550_v37 = vmul.f32 %v548_v31, %v1878_v1  ;;  %v1987_v31 = vld [vmem:[#allocation2 + $0x3] sm:$0xff] }
  0xb8   : > { %299 = vrot.lane.b32.xlu0 %v295_v39, %s1747_s11  ;;  %287 = vrot.lane.b32.xlu1 %v282_v40, %s1746_s6  ;;  %v1928_v39 = vld [vmem:[#allocation2 + $0xa] sm:$0xff]  ;;  %v592_v40 = vstv %s1606_s30  ;;  %s2039_s30 = sld [smem:[#allocation3 + $0x99]] }
  0xb9   : > { %v593_v41 = vmul.f32 %v592_v40, %v1926_v38  ;;  %v636_v57 = vmul.f32 %v634_v50, %v1928_v39 }
  0xbc   : > { %313 = vrot.lane.b32.xlu0 %v309_v42, %s1747_s11  ;;  %301 = vrot.lane.b32.xlu1 %v296_v43, %s1747_s11  ;;  %v580_v42 = vmul.f32 %v578_v35, %v1928_v39  ;;  %v1934_v43 = vld [vmem:[#allocation2 + $0x22] sm:$0xff] }
  0xbd   : > { %v678_v11 = vmul.f32 %v676_v2, %v1934_v43 }
  0xc0   : > { %327 = vrot.lane.b32.xlu0 %v323_v45, %s1748_s14  ;;  %315 = vrot.lane.b32.xlu1 %v310_v46, %s1747_s11  ;;  %v607_v45 = vmul.f32 %v606_v44, %v1920_v34  ;;  %v594_v46 = vmul.f32 %v592_v40, %v1934_v43 }
  0xc4   : > { %341 = vrot.lane.b32.xlu0 %v337_v48, %s1748_s14  ;;  %329 = vrot.lane.b32.xlu1 %v324_v49, %s1748_s14  ;;  %v621_v48 = vmul.f32 %v620_v47, %v1926_v38  ;;  %v608_v49 = vmul.f32 %v606_v44, %v1928_v39  ;;  %v1997_v44 = vld [vmem:[#allocation2 + $0x1b] sm:$0xff] }
  0xc8   : > { %355 = vrot.lane.b32.xlu0 %v351_v51, %s1749_s17  ;;  %343 = vrot.lane.b32.xlu1 %v338_v52, %s1748_s14  ;;  %v635_v51 = vmul.f32 %v634_v50, %v1920_v34  ;;  %v622_v52 = vmul.f32 %v620_v47, %v1934_v43 }
  0xcc   : > { %369 = vrot.lane.b32.xlu0 %v365_v54, %s1749_s17  ;;  %357 = vrot.lane.b32.xlu1 %v352_v55, %s1749_s17  ;;  %v649_v55 = vmul.f32 %v648_v53, %v1926_v38 }
  0xd0   : > { %399 = vrot.lane.b32.xlu0 %v395_v58, %s1744_s28  ;;  %371 = vrot.lane.b32.xlu1 %v366_v59, %s1749_s17  ;;  %v662_v58 = vstv %s1611_s12  ;;  %s2074_s12 = sld [smem:[#allocation3 + $0x1d]] }
  0xd4   : > { %413 = vrot.lane.b32.xlu0 %v409_v63, %s1744_s28  ;;  %401 = vrot.lane.b32.xlu1 %v396_v0, %s1744_s28  ;;  %v663_v63 = vmul.f32 %v662_v58, %v1920_v34  ;;  %v650_v0 = vmul.f32 %v648_v53, %v1934_v43 }
  0xd8   : > { %427 = vrot.lane.b32.xlu0 %v423_v3, %s1745_s3  ;;  %415 = vrot.lane.b32.xlu1 %v410_v4, %s1744_s28 }
  0xdc   : > { %441 = vrot.lane.b32.xlu0 %v437_v6, %s1745_s3  ;;  %429 = vrot.lane.b32.xlu1 %v424_v7, %s1745_s3  ;;  %v664_v6 = vmul.f32 %v662_v58, %v1928_v39  ;;  %v690_v7 = vstv %s1613_s15  ;;  %s2090_s15 = sld [smem:[#allocation3 + $0x1e]] }
  0xe0   : > { %455 = vrot.lane.b32.xlu0 %v451_v9, %s1746_s6  ;;  %443 = vrot.lane.b32.xlu1 %v438_v10, %s1745_s3  ;;  %v691_v10 = vmul.f32 %v690_v7, %v1920_v34 }
  0xe4   : > { %469 = vrot.lane.b32.xlu0 %v465_v12, %s1746_s6  ;;  %457 = vrot.lane.b32.xlu1 %v452_v13, %s1746_s6  ;;  %v704_v12 = vstv %s1614_s16  ;;  %s2101_s16 = sld [smem:[#allocation3 + $0x9e]] }
  0xe8   : > { %483 = vrot.lane.b32.xlu0 %v479_v15, %s1747_s11  ;;  %471 = vrot.lane.b32.xlu1 %v466_v16, %s1746_s6  ;;  %v705_v15 = vmul.f32 %v704_v12, %v1926_v38  ;;  %v692_v16 = vmul.f32 %v690_v7, %v1928_v39 }
  0xec   : > { %497 = vrot.lane.b32.xlu0 %v493_v19, %s1747_s11  ;;  %485 = vrot.lane.b32.xlu1 %v480_v20, %s1747_s11 }
  0xf0   : > { %511 = vrot.lane.b32.xlu0 %v507_v22, %s1748_s14  ;;  %499 = vrot.lane.b32.xlu1 %v494_v23, %s1747_s11  ;;  %v706_v22 = vmul.f32 %v704_v12, %v1934_v43  ;;  %v732_v23 = vstv %s1966_s19  ;;  %s2112_s19 = sld [smem:[#allocation3 + $0xe]] }
  0xf1   : > { %v733_v28 = vmul.f32 %v732_v23, %v1926_v38  ;;  %v734_v40 = vmul.f32 %v732_v23, %v1934_v43 }
  0xf4   : > { %525 = vrot.lane.b32.xlu0 %v521_v25, %s1748_s14  ;;  %513 = vrot.lane.b32.xlu1 %v508_v27, %s1748_s14 }
  0xf8   : > { %539 = vrot.lane.b32.xlu0 %v535_v29, %s1749_s17  ;;  %527 = vrot.lane.b32.xlu1 %v522_v30, %s1748_s14  ;;  %v720_v29 = vmul.f32 %v718_v17, %v1928_v39  ;;  %v388_v17 = vstv %s2017_s26  ;;  %s1643_s26 = sld [smem:[#allocation3 + $0x22]] }
  0xfc   : > { %553 = vrot.lane.b32.xlu0 %v549_v32, %s1749_s17  ;;  %541 = vrot.lane.b32.xlu1 %v536_v33, %s1749_s17  ;;  %v762_v32 = vstv %s1973_s20  ;;  %s2116_s20 = sld [smem:[#allocation3 + $0x8e]] }
 0x100   : > { %583 = vrot.lane.b32.xlu0 %v579_v36, %s1744_s28  ;;  %555 = vrot.lane.b32.xlu1 %v550_v37, %s1749_s17  ;;  %v763_v37 = vmul.f32 %v762_v32, %v1987_v31 }
 0x104   : > { %597 = vrot.lane.b32.xlu0 %v593_v41, %s1744_s28  ;;  %585 = vrot.lane.b32.xlu1 %v580_v42, %s1744_s28 }
 0x108   : > { %611 = vrot.lane.b32.xlu0 %v607_v45, %s1745_s3  ;;  %599 = vrot.lane.b32.xlu1 %v594_v46, %s1744_s28  ;;  %v776_v45 = vstv %s1980_s21  ;;  %v2000_v46 = vld [vmem:[#allocation2 + $0xb] sm:$0xff]  ;;  %s2121_s21 = sld [smem:[#allocation3 + $0x9f]] }
 0x109   : > { %v777_v50 = vmul.f32 %v776_v45, %v1997_v44 }
 0x10c   : > { %625 = vrot.lane.b32.xlu0 %v621_v48, %s1745_s3  ;;  %613 = vrot.lane.b32.xlu1 %v608_v49, %s1745_s3 }
 0x110   : > { %639 = vrot.lane.b32.xlu0 %v635_v51, %s1746_s6  ;;  %627 = vrot.lane.b32.xlu1 %v622_v52, %s1745_s3  ;;  %v764_v51 = vmul.f32 %v762_v32, %v2000_v46 }
 0x112   : > { %v216_v54 = vpop.permute.xlu0 %215 }
 0x113   : > { %v221_v24 = vadd.f32 %v216_v54, %v1811_v18  ;;  %v790_v54 = vstv %s1990_s22  ;;  %s2128_s22 = sld [smem:[#allocation3 + $0x20]] }
 0x114   : > { %653 = vrot.lane.b32.xlu0 %v649_v55, %s1746_s6  ;;  %641 = vrot.lane.b32.xlu1 %v636_v57, %s1746_s6  ;;  %v2009_v55 = vld [vmem:[#allocation2 + $0x23] sm:$0xff] }
 0x116   : > { %v218_v59 = vpop.permute.xlu1 %217  ;;  %v230_v62 = vpop.permute.xlu0 %229 }
 0x117   : > { %v235_v30 = vadd.f32 %v230_v62, %v221_v24  ;;  %v222_v33 = vadd.f32 %v218_v59, %v1822_v26 }
 0x118   : > { %667 = vrot.lane.b32.xlu0 %v663_v63, %s1747_s11  ;;  %655 = vrot.lane.b32.xlu1 %v650_v0, %s1746_s6  ;;  %v791_v63 = vmul.f32 %v790_v54, %v1987_v31  ;;  %v778_v0 = vmul.f32 %v776_v45, %v2009_v55 }
 0x11a   : > { %v232_v3 = vpop.permute.xlu1 %231  ;;  %v244_v4 = vpop.permute.xlu0 %243 }
 0x11b   : > { %v249_v18 = vadd.f32 %v244_v4, %v235_v30  ;;  %v236_v41 = vadd.f32 %v232_v3, %v222_v33  ;;  %v804_v4 = vstv %s2002_s23  ;;  %s2138_s23 = sld [smem:[#allocation3 + $0xa0]] }
 0x11c   : > { %681 = vrot.lane.b32.xlu0 %v677_v5, %s1747_s11  ;;  %669 = vrot.lane.b32.xlu1 %v664_v6, %s1747_s11 }
 0x11e   : > { %v246_v8 = vpop.permute.xlu1 %245  ;;  %v258_v9 = vpop.permute.xlu0 %257 }
 0x11f   : > { %v263_v42 = vadd.f32 %v258_v9, %v249_v18  ;;  %v250_v26 = vadd.f32 %v246_v8, %v236_v41  ;;  %v805_v9 = vmul.f32 %v804_v4, %v1997_v44 }
 0x120   : > { %695 = vrot.lane.b32.xlu0 %v691_v10, %s1748_s14  ;;  %683 = vrot.lane.b32.xlu1 %v678_v11, %s1747_s11  ;;  %v792_v10 = vmul.f32 %v790_v54, %v2000_v46 }
 0x122   : > { %v260_v13 = vpop.permute.xlu1 %259  ;;  %v272_v14 = vpop.permute.xlu0 %271 }
 0x123   : > { %v277_v47 = vadd.f32 %v272_v14, %v263_v42  ;;  %v264_v52 = vadd.f32 %v260_v13, %v250_v26  ;;  %v818_v13 = vstv %s2011_s24  ;;  %v382_v14 = vstv %s2013_s25  ;;  %s2147_s24 = sld [smem:[#allocation3 + $0x21]] }
 0x124   : > { %709 = vrot.lane.b32.xlu0 %v705_v15, %s1748_s14  ;;  %697 = vrot.lane.b32.xlu1 %v692_v16, %s1748_s14  ;;  %v383_v23 = vmul.f32 %v382_v14, %v1864_v56  ;;  %v820_v56 = vmul.f32 %v818_v13, %v2000_v46  ;;  %s1642_s25 = sld [smem:[#allocation3 + $0xa1]] }
 0x126   : > { %v274_v19 = vpop.permute.xlu1 %273  ;;  %v286_v20 = vpop.permute.xlu0 %285 }
 0x127   : > { %v291_v53 = vadd.f32 %v286_v20, %v277_v47  ;;  %v278_v57 = vadd.f32 %v274_v19, %v264_v52  ;;  %v874_v52 = vstv %s2048_s4  ;;  %s2186_s4 = sld [smem:[#allocation3 + $0x25]] }
 0x128   : > { %723 = vrot.lane.b32.xlu0 %v719_v21, %s1749_s17  ;;  %711 = vrot.lane.b32.xlu1 %v706_v22, %s1748_s14  ;;  %v819_v21 = vmul.f32 %v818_v13, %v1987_v31  ;;  %v806_v22 = vmul.f32 %v804_v4, %v2009_v55 }
 0x12a   : > { %v288_v25 = vpop.permute.xlu1 %287  ;;  %v300_v27 = vpop.permute.xlu0 %299 }
 0x12b   : > { %v305_v58 = vadd.f32 %v300_v27, %v291_v53  ;;  %v292_v2 = vadd.f32 %v288_v25, %v278_v57  ;;  %v832_v27 = vstv %s2022_s27  ;;  %v875_v57 = vmul.f32 %v874_v52, %v1987_v31  ;;  %s2164_s27 = sld [smem:[#allocation3 + $0xa2]] }
 0x12c   : > { %737 = vrot.lane.b32.xlu0 %v733_v28, %s1749_s17  ;;  %725 = vrot.lane.b32.xlu1 %v720_v29, %s1749_s17  ;;  %v389_v28 = vmul.f32 %v388_v17, %v1870_v60  ;;  %v833_v18 = vmul.f32 %v832_v27, %v1997_v44  ;;  %v390_v60 = vmul.f32 %v388_v17, %v1878_v1  ;;  %v946_v17 = vstv %s2074_s12  ;;  %s2214_s12 = sld [smem:[#allocation3 + $0x95]] }
 0x12d   : > { %v834_v47 = vmul.f32 %v832_v27, %v2009_v55  ;;  %v2096_v27 = vld [vmem:[#allocation2 + $0xc] sm:$0xff] }
 0x12e   : > { %v302_v35 = vpop.permute.xlu1 %301  ;;  %v314_v36 = vpop.permute.xlu0 %313 }
 0x12f   : > { %v319_v3 = vadd.f32 %v314_v36, %v305_v58  ;;  %v306_v5 = vadd.f32 %v302_v35, %v292_v2  ;;  %v384_v35 = vmul.f32 %v382_v14, %v1872_v61  ;;  %v876_v2 = vmul.f32 %v874_v52, %v2000_v46 }
 0x130   : > { %767 = vrot.lane.b32.xlu0 %v763_v37, %s1744_s28  ;;  %739 = vrot.lane.b32.xlu1 %v734_v40, %s1749_s17  ;;  %v846_v40 = vstv %s2029_s29  ;;  %s2170_s29 = sld [smem:[#allocation3 + $0x24]] }
 0x131   : > { %v847_v26 = vmul.f32 %v846_v40, %v1987_v31  ;;  %v848_v1 = vmul.f32 %v846_v40, %v2000_v46  ;;  %v2107_v40 = vld [vmem:[#allocation2 + $0x24] sm:$0xff] }
 0x132   : > { %v316_v48 = vpop.permute.xlu1 %315  ;;  %v328_v49 = vpop.permute.xlu0 %327 }
 0x133   : > { %v333_v6 = vadd.f32 %v328_v49, %v319_v3  ;;  %v320_v11 = vadd.f32 %v316_v48, %v306_v5  ;;  %v860_v48 = vstv %s2039_s30  ;;  %v902_v3 = vstv %s2061_s7  ;;  %s2177_s30 = sld [smem:[#allocation3 + $0xa4]]  ;;  %s2206_s7 = sld [smem:[#allocation3 + $0x26]] }
 0x134   : > { %781 = vrot.lane.b32.xlu0 %v777_v50, %s1744_s28  ;;  %769 = vrot.lane.b32.xlu1 %v764_v51, %s1744_s28  ;;  %v861_v51 = vmul.f32 %v860_v48, %v1997_v44  ;;  %v862_v58 = vmul.f32 %v860_v48, %v2009_v55  ;;  %v904_v13 = vmul.f32 %v902_v3, %v2000_v46 }
 0x136   : > { %v330_v59 = vpop.permute.xlu1 %329  ;;  %v342_v62 = vpop.permute.xlu0 %341 }
 0x137   : > { %v347_v12 = vadd.f32 %v342_v62, %v333_v6  ;;  %v334_v15 = vadd.f32 %v330_v59, %v320_v11  ;;  %v888_v59 = vstv %s1628_s5  ;;  %v903_v6 = vmul.f32 %v902_v3, %v1987_v31  ;;  %s2197_s5 = sld [smem:[#allocation3 + $0xa5]] }
 0x138   : > { %795 = vrot.lane.b32.xlu0 %v791_v63, %s1745_s3  ;;  %783 = vrot.lane.b32.xlu1 %v778_v0, %s1744_s28  ;;  %v889_v0 = vmul.f32 %v888_v59, %v1997_v44  ;;  %v572_v3 = vstv %s2116_s20  ;;  %s2258_s20 = sld [smem:[#allocation3 + $0x29]] }
 0x13a   : > { %v344_v7 = vpop.permute.xlu1 %343  ;;  %v356_v8 = vpop.permute.xlu0 %355 }
 0x13b   : > { %v361_v16 = vadd.f32 %v356_v8, %v347_v12  ;;  %v348_v24 = vadd.f32 %v344_v7, %v334_v15  ;;  %v890_v7 = vmul.f32 %v888_v59, %v2009_v55 }
 0x13c   : > { %809 = vrot.lane.b32.xlu0 %v805_v9, %s1745_s3  ;;  %797 = vrot.lane.b32.xlu1 %v792_v10, %s1745_s3  ;;  %v916_v9 = vstv %s2067_s8  ;;  %s2210_s8 = sld [smem:[#allocation3 + $0x15]] }
 0x13d   : > { %v917_v12 = vmul.f32 %v916_v9, %v1997_v44 }
 0x13e   : > { %v358_v19 = vpop.permute.xlu1 %357  ;;  %v370_v20 = vpop.permute.xlu0 %369 }
 0x13f   : > { %v375_v25 = vadd.f32 %v370_v20, %v361_v16  ;;  %v362_v29 = vadd.f32 %v358_v19, %v348_v24  ;;  %v2087_v16 = vld [vmem:[#allocation2 + $0x4] sm:$0xff] }
 0x140   : > { %823 = vrot.lane.b32.xlu0 %v819_v21, %s1746_s6  ;;  %811 = vrot.lane.b32.xlu1 %v806_v22, %s1745_s3  ;;  %v947_v22 = vmul.f32 %v946_v17, %v2087_v16 }
 0x141   : > { %v385_v30 = vadd.f32 %v383_v23, %v375_v25  ;;  %v918_v23 = vmul.f32 %v916_v9, %v2009_v55 }
 0x142   : > { %v372_v32 = vpop.permute.xlu1 %371  ;;  %v400_v33 = vpop.permute.xlu0 %399 }
 0x143   : > { %v391_v36 = vadd.f32 %v389_v28, %v385_v30  ;;  %v376_v37 = vadd.f32 %v372_v32, %v362_v29  ;;  %v2098_v28 = vld [vmem:[#allocation2 + $0x1c] sm:$0xff]  ;;  %v960_v29 = vstv %s2081_s13  ;;  %s2217_s13 = sld [smem:[#allocation3 + $0xa6]] }
 0x144   : > { %837 = vrot.lane.b32.xlu0 %v833_v18, %s1746_s6  ;;  %825 = vrot.lane.b32.xlu1 %v820_v56, %s1746_s6  ;;  %v948_v56 = vmul.f32 %v946_v17, %v2096_v27 }
 0x145   : > { %v386_v41 = vadd.f32 %v384_v35, %v376_v37  ;;  %v405_v8 = vadd.f32 %v400_v33, %v391_v36  ;;  %v961_v35 = vmul.f32 %v960_v29, %v2098_v28 }
 0x146   : > { %v402_v42 = vpop.permute.xlu1 %401  ;;  %v414_v45 = vpop.permute.xlu0 %413 }
 0x147   : > { %v392_v61 = vadd.f32 %v390_v60, %v386_v41  ;;  %v419_v15 = vadd.f32 %v414_v45, %v405_v8  ;;  %v974_v60 = vstv %s2090_s15  ;;  %s2224_s15 = sld [smem:[#allocation3 + $0x27]] }
 0x148   : > { %851 = vrot.lane.b32.xlu0 %v847_v26, %s1747_s11  ;;  %839 = vrot.lane.b32.xlu1 %v834_v47, %s1746_s6  ;;  %v962_v47 = vmul.f32 %v960_v29, %v2107_v40 }
 0x149   : > { %v406_v14 = vadd.f32 %v402_v42, %v392_v61  ;;  %v975_v61 = vmul.f32 %v974_v60, %v2087_v16 }
 0x14a   : > { %v416_v49 = vpop.permute.xlu1 %415  ;;  %v428_v50 = vpop.permute.xlu0 %427 }
 0x14b   : > { %v433_v19 = vadd.f32 %v428_v50, %v419_v15  ;;  %v420_v24 = vadd.f32 %v416_v49, %v406_v14  ;;  %v988_v50 = vstv %s2101_s16  ;;  %s2234_s16 = sld [smem:[#allocation3 + $0xa7]] }
 0x14c   : > { %865 = vrot.lane.b32.xlu0 %v861_v51, %s1747_s11  ;;  %853 = vrot.lane.b32.xlu1 %v848_v1, %s1747_s11 }
 0x14e   : > { %v430_v53 = vpop.permute.xlu1 %429  ;;  %v442_v54 = vpop.permute.xlu0 %441 }
 0x14f   : > { %v447_v25 = vadd.f32 %v442_v54, %v433_v19  ;;  %v434_v30 = vadd.f32 %v430_v53, %v420_v24  ;;  %v976_v54 = vmul.f32 %v974_v60, %v2096_v27 }
 0x150   : > { %879 = vrot.lane.b32.xlu0 %v875_v57, %s1748_s14  ;;  %867 = vrot.lane.b32.xlu1 %v862_v58, %s1747_s11  ;;  %v989_v57 = vmul.f32 %v988_v50, %v2098_v28 }
 0x152   : > { %v444_v62 = vpop.permute.xlu1 %443  ;;  %v456_v63 = vpop.permute.xlu0 %455 }
 0x153   : > { %v461_v32 = vadd.f32 %v456_v63, %v447_v25  ;;  %v448_v36 = vadd.f32 %v444_v62, %v434_v30  ;;  %v1002_v62 = vstv %s2110_s18  ;;  %v566_v63 = vstv %s2112_s19  ;;  %s2243_s18 = sld [smem:[#allocation3 + $0x28]] }
 0x154   : > { %893 = vrot.lane.b32.xlu0 %v889_v0, %s1748_s14  ;;  %881 = vrot.lane.b32.xlu1 %v876_v2, %s1748_s14  ;;  %v567_v8 = vmul.f32 %v566_v63, %v1920_v34  ;;  %v1004_v19 = vmul.f32 %v1002_v62, %v2096_v27  ;;  %s2251_s19 = sld [smem:[#allocation3 + $0xa8]] }
 0x156   : > { %v458_v4 = vpop.permute.xlu1 %457  ;;  %v470_v5 = vpop.permute.xlu0 %469 }
 0x157   : > { %v475_v37 = vadd.f32 %v470_v5, %v461_v32  ;;  %v462_v41 = vadd.f32 %v458_v4, %v448_v36  ;;  %v1058_v36 = vstv %s2147_s24  ;;  %s2288_s24 = sld [smem:[#allocation3 + $0x2c]] }
 0x158   : > { %907 = vrot.lane.b32.xlu0 %v903_v6, %s1749_s17  ;;  %895 = vrot.lane.b32.xlu1 %v890_v7, %s1748_s14  ;;  %v990_v6 = vmul.f32 %v988_v50, %v2107_v40  ;;  %v1003_v7 = vmul.f32 %v1002_v62, %v2087_v16 }
 0x15a   : > { %v472_v10 = vpop.permute.xlu1 %471  ;;  %v484_v11 = vpop.permute.xlu0 %483 }
 0x15b   : > { %v489_v42 = vadd.f32 %v484_v11, %v475_v37  ;;  %v476_v48 = vadd.f32 %v472_v10, %v462_v41  ;;  %v1016_v11 = vstv %s2121_s21  ;;  %s2265_s21 = sld [smem:[#allocation3 + $0xa9]] }
 0x15c   : > { %921 = vrot.lane.b32.xlu0 %v917_v12, %s1749_s17  ;;  %909 = vrot.lane.b32.xlu1 %v904_v13, %s1749_s17  ;;  %v573_v12 = vmul.f32 %v572_v3, %v1926_v38  ;;  %v1017_v34 = vmul.f32 %v1016_v11, %v2098_v28  ;;  %v574_v38 = vmul.f32 %v572_v3, %v1934_v43  ;;  %v1130_v3 = vstv %s2170_s29  ;;  %s2316_s29 = sld [smem:[#allocation3 + $0x9c]] }
 0x15d   : > { %v1018_v30 = vmul.f32 %v1016_v11, %v2107_v40  ;;  %v2192_v11 = vld [vmem:[#allocation2 + $0xd] sm:$0xff] }
 0x15e   : > { %v486_v20 = vpop.permute.xlu1 %485  ;;  %v498_v21 = vpop.permute.xlu0 %497 }
 0x15f   : > { %v503_v49 = vadd.f32 %v498_v21, %v489_v42  ;;  %v490_v51 = vadd.f32 %v486_v20, %v476_v48  ;;  %v568_v20 = vmul.f32 %v566_v63, %v1928_v39  ;;  %v1059_v42 = vmul.f32 %v1058_v36, %v2087_v16 }
 0x160   : > { %951 = vrot.lane.b32.xlu0 %v947_v22, %s1744_s28  ;;  %923 = vrot.lane.b32.xlu1 %v918_v23, %s1749_s17  ;;  %v1030_v23 = vstv %s2128_s22  ;;  %s2272_s22 = sld [smem:[#allocation3 + $0x2b]] }
 0x161   : > { %v1031_v32 = vmul.f32 %v1030_v23, %v2087_v16 }
 0x162   : > { %v500_v33 = vpop.permute.xlu1 %499  ;;  %v512_v18 = vpop.permute.xlu0 %511 }
 0x163   : > { %v517_v1 = vadd.f32 %v512_v18, %v503_v49  ;;  %v504_v58 = vadd.f32 %v500_v33, %v490_v51  ;;  %v1044_v33 = vstv %s2138_s23  ;;  %v1086_v49 = vstv %s1643_s26  ;;  %s2279_s23 = sld [smem:[#allocation3 + $0xab]]  ;;  %s2308_s26 = sld [smem:[#allocation3 + $0x2d]] }
 0x164   : > { %953 = vrot.lane.b32.xlu1 %v948_v56, %s1744_s28  ;;  %965 = vrot.lane.b32.xlu0 %v961_v35, %s1744_s28  ;;  %v1032_v35 = vmul.f32 %v1030_v23, %v2096_v27  ;;  %v1045_v43 = vmul.f32 %v1044_v33, %v2098_v28  ;;  %v1046_v41 = vmul.f32 %v1044_v33, %v2107_v40  ;;  %v2203_v23 = vld [vmem:[#allocation2 + $0x25] sm:$0xff] }
 0x166   : > { %v514_v45 = vpop.permute.xlu1 %513  ;;  %v526_v26 = vpop.permute.xlu0 %525 }
 0x167   : > { %v531_v59 = vadd.f32 %v526_v26, %v517_v1  ;;  %v518_v0 = vadd.f32 %v514_v45, %v504_v58  ;;  %v1072_v45 = vstv %s1642_s25  ;;  %s2299_s25 = sld [smem:[#allocation3 + $0xac]] }
 0x168   : > { %967 = vrot.lane.b32.xlu1 %v962_v47, %s1744_s28  ;;  %979 = vrot.lane.b32.xlu0 %v975_v61, %s1745_s3  ;;  %v1060_v61 = vmul.f32 %v1058_v36, %v2096_v27  ;;  %v1073_v48 = vmul.f32 %v1072_v45, %v2098_v28  ;;  %v1074_v1 = vmul.f32 %v1072_v45, %v2107_v40 }
 0x16a   : > { %v528_v52 = vpop.permute.xlu1 %527  ;;  %v540_v53 = vpop.permute.xlu0 %539 }
 0x16b   : > { %v545_v2 = vadd.f32 %v540_v53, %v531_v59  ;;  %v532_v9 = vadd.f32 %v528_v52, %v518_v0  ;;  %v1087_v52 = vmul.f32 %v1086_v49, %v2087_v16  ;;  %v1088_v59 = vmul.f32 %v1086_v49, %v2096_v27 }
 0x16c   : > { %981 = vrot.lane.b32.xlu1 %v976_v54, %s1745_s3  ;;  %993 = vrot.lane.b32.xlu0 %v989_v57, %s1745_s3  ;;  %v1100_v54 = vstv %s2164_s27  ;;  %s2312_s27 = sld [smem:[#allocation3 + $0x1c]] }
 0x16d   : > { %v1101_v62 = vmul.f32 %v1100_v54, %v2098_v28 }
 0x16e   : > { %v542_v4 = vpop.permute.xlu1 %541  ;;  %v554_v5 = vpop.permute.xlu0 %553 }
 0x16f   : > { %v559_v10 = vadd.f32 %v554_v5, %v545_v2  ;;  %v546_v13 = vadd.f32 %v542_v4, %v532_v9  ;;  %v2183_v2 = vld [vmem:[#allocation2 + $0x5] sm:$0xff] }
 0x170   : > { %995 = vrot.lane.b32.xlu1 %v990_v6, %s1745_s3  ;;  %1007 = vrot.lane.b32.xlu0 %v1003_v7, %s1746_s6  ;;  %v1102_v7 = vmul.f32 %v1100_v54, %v2107_v40 }
 0x171   : > { %v569_v14 = vadd.f32 %v567_v8, %v559_v10  ;;  %v1131_v8 = vmul.f32 %v1130_v3, %v2183_v2 }
 0x172   : > { %v556_v15 = vpop.permute.xlu1 %555  ;;  %v584_v17 = vpop.permute.xlu0 %583 }
 0x173   : > { %v575_v21 = vadd.f32 %v573_v12, %v569_v14  ;;  %v560_v22 = vadd.f32 %v556_v15, %v546_v13  ;;  %v2194_v12 = vld [vmem:[#allocation2 + $0x1d] sm:$0xff]  ;;  %v1144_v13 = vstv %s2177_s30  ;;  %s2319_s30 = sld [smem:[#allocation3 + $0xad]] }
 0x174   : > { %1009 = vrot.lane.b32.xlu1 %v1004_v19, %s1746_s6  ;;  %1021 = vrot.lane.b32.xlu0 %v1017_v34, %s1746_s6  ;;  %v1132_v34 = vmul.f32 %v1130_v3, %v2192_v11 }
 0x175   : > { %v570_v24 = vadd.f32 %v568_v20, %v560_v22  ;;  %v589_v53 = vadd.f32 %v584_v17, %v575_v21  ;;  %v1145_v20 = vmul.f32 %v1144_v13, %v2194_v12 }
 0x176   : > { %v586_v25 = vpop.permute.xlu1 %585  ;;  %v598_v29 = vpop.permute.xlu0 %597 }
 0x177   : > { %v576_v39 = vadd.f32 %v574_v38, %v570_v24  ;;  %v603_v0 = vadd.f32 %v598_v29, %v589_v53  ;;  %v1158_v38 = vstv %s2186_s4  ;;  %s2326_s4 = sld [smem:[#allocation3 + $0x2e]] }
 0x178   : > { %1023 = vrot.lane.b32.xlu1 %v1018_v30, %s1746_s6  ;;  %1035 = vrot.lane.b32.xlu0 %v1031_v32, %s1747_s11  ;;  %v1146_v32 = vmul.f32 %v1144_v13, %v2203_v23 }
 0x179   : > { %v590_v63 = vadd.f32 %v586_v25, %v576_v39  ;;  %v1159_v39 = vmul.f32 %v1158_v38, %v2183_v2 }
 0x17a   : > { %v600_v18 = vpop.permute.xlu1 %599  ;;  %v612_v56 = vpop.permute.xlu0 %611 }
 0x17b   : > { %v617_v4 = vadd.f32 %v612_v56, %v603_v0  ;;  %v604_v9 = vadd.f32 %v600_v18, %v590_v63  ;;  %v1172_v56 = vstv %s2197_s5  ;;  %s2345_s5 = sld [smem:[#allocation3 + $0x2f]] }
 0x17c   : > { %1037 = vrot.lane.b32.xlu1 %v1032_v35, %s1747_s11  ;;  %1049 = vrot.lane.b32.xlu0 %v1045_v43, %s1747_s11 }
 0x17e   : > { %v614_v37 = vpop.permute.xlu1 %613  ;;  %v626_v60 = vpop.permute.xlu0 %625 }
 0x17f   : > { %v631_v10 = vadd.f32 %v626_v60, %v617_v4  ;;  %v618_v14 = vadd.f32 %v614_v37, %v604_v9  ;;  %v1160_v60 = vmul.f32 %v1158_v38, %v2192_v11 }
 0x180   : > { %1051 = vrot.lane.b32.xlu1 %v1046_v41, %s1747_s11  ;;  %1063 = vrot.lane.b32.xlu0 %v1059_v42, %s1748_s14  ;;  %v1173_v41 = vmul.f32 %v1172_v56, %v2194_v12 }
 0x182   : > { %v628_v26 = vpop.permute.xlu1 %627  ;;  %v640_v47 = vpop.permute.xlu0 %639 }
 0x183   : > { %v645_v15 = vadd.f32 %v640_v47, %v631_v10  ;;  %v632_v21 = vadd.f32 %v628_v26, %v618_v14  ;;  %v1186_v26 = vstv %s2206_s7  ;;  %v750_v47 = vstv %s2210_s8  ;;  %s1671_s7 = sld [smem:[#allocation3 + $0x30]]  ;;  %s1660_s8 = sld [smem:[#allocation3 + $0xaa]] }
 0x184   : > { %1065 = vrot.lane.b32.xlu1 %v1060_v61, %s1748_s14  ;;  %1077 = vrot.lane.b32.xlu0 %v1073_v48, %s1748_s14  ;;  %v751_v54 = vmul.f32 %v750_v47, %v1987_v31  ;;  %v1188_v4 = vmul.f32 %v1186_v26, %v2192_v11 }
 0x186   : > { %v642_v50 = vpop.permute.xlu1 %641  ;;  %v654_v51 = vpop.permute.xlu0 %653 }
 0x187   : > { %v659_v22 = vadd.f32 %v654_v51, %v645_v15  ;;  %v646_v24 = vadd.f32 %v642_v50, %v632_v21  ;;  %v756_v50 = vstv %s2214_s12  ;;  %s1678_s12 = sshll.u32 %s2398_s10, 4 }
 0x188   : > { %1079 = vrot.lane.b32.xlu1 %v1074_v1, %s1748_s14  ;;  %1091 = vrot.lane.b32.xlu0 %v1087_v52, %s1749_s17  ;;  %v1174_v1 = vmul.f32 %v1172_v56, %v2203_v23  ;;  %v1187_v52 = vmul.f32 %v1186_v26, %v2183_v2 }
 0x18a   : > { %v656_v57 = vpop.permute.xlu1 %655  ;;  %v668_v58 = vpop.permute.xlu0 %667 }
 0x18b   : > { %v673_v25 = vadd.f32 %v668_v58, %v659_v22  ;;  %v660_v33 = vadd.f32 %v656_v57, %v646_v24  ;;  %v1200_v58 = vstv %s2217_s13 }
 0x18c   : > { %1093 = vrot.lane.b32.xlu1 %v1088_v59, %s1749_s17  ;;  %1105 = vrot.lane.b32.xlu0 %v1101_v62, %s1749_s17  ;;  %v757_v62 = vmul.f32 %v756_v50, %v1997_v44  ;;  %v758_v44 = vmul.f32 %v756_v50, %v2009_v55  ;;  %v1202_v15 = vmul.f32 %v1200_v58, %v2203_v23 }
 0x18e   : > { %v670_v5 = vpop.permute.xlu1 %669  ;;  %v682_v6 = vpop.permute.xlu0 %681 }
 0x18f   : > { %v687_v18 = vadd.f32 %v682_v6, %v673_v25  ;;  %v674_v35 = vadd.f32 %v670_v5, %v660_v33  ;;  %v1201_v5 = vmul.f32 %v1200_v58, %v2194_v12  ;;  %v752_v6 = vmul.f32 %v750_v47, %v2000_v46 }
 0x190   : > { %1107 = vrot.lane.b32.xlu1 %v1102_v7, %s1749_s17  ;;  %1135 = vrot.lane.b32.xlu0 %v1131_v8, %s1744_s28  ;;  %v1214_v8 = vstv %s2224_s15 }
 0x191   : > { %v1216_v22 = vmul.f32 %v1214_v8, %v2192_v11 }
 0x192   : > { %v684_v17 = vpop.permute.xlu1 %683  ;;  %v696_v19 = vpop.permute.xlu0 %695 }
 0x193   : > { %v701_v43 = vadd.f32 %v696_v19, %v687_v18  ;;  %v688_v42 = vadd.f32 %v684_v17, %v674_v35  ;;  %v1215_v17 = vmul.f32 %v1214_v8, %v2183_v2  ;;  %v1256_v35 = vstv %s2251_s19 }
 0x194   : > { %1137 = vrot.lane.b32.xlu1 %v1132_v34, %s1744_s28  ;;  %1149 = vrot.lane.b32.xlu0 %v1145_v20, %s1744_s28  ;;  %v1228_v34 = vstv %s2234_s16  ;;  %v1328_v8 = vstv %s2279_s23  ;;  %s157_s16 = scalar_lea.vmem %s2395_s2, %s1678_s12 }
 0x195   : > { %v1229_v38 = vmul.f32 %v1228_v34, %v2194_v12 }
 0x196   : > { %v698_v29 = vpop.permute.xlu1 %697  ;;  %v710_v30 = vpop.permute.xlu0 %709 }
 0x197   : > { %v715_v45 = vadd.f32 %v710_v30, %v701_v43  ;;  %v702_v61 = vadd.f32 %v698_v29, %v688_v42  ;;  %v1242_v29 = vstv %s2243_s18 }
 0x198   : > { %1151 = vrot.lane.b32.xlu1 %v1146_v32, %s1744_s28  ;;  %1163 = vrot.lane.b32.xlu0 %v1159_v39, %s1745_s3  ;;  %v1230_v39 = vmul.f32 %v1228_v34, %v2203_v23  ;;  %v1243_v33 = vmul.f32 %v1242_v29, %v2183_v2 }
 0x19a   : > { %v712_v36 = vpop.permute.xlu1 %711  ;;  %v724_v37 = vpop.permute.xlu0 %723 }
 0x19b   : > { %v729_v48 = vadd.f32 %v724_v37, %v715_v45  ;;  %v716_v53 = vadd.f32 %v712_v36, %v702_v61  ;;  %v1244_v37 = vmul.f32 %v1242_v29, %v2192_v11  ;;  %v1270_v45 = vstv %s2258_s20 }
 0x19c   : > { %1165 = vrot.lane.b32.xlu1 %v1160_v60, %s1745_s3  ;;  %1177 = vrot.lane.b32.xlu0 %v1173_v41, %s1745_s3  ;;  %v1257_v60 = vmul.f32 %v1256_v35, %v2194_v12  ;;  %v1258_v61 = vmul.f32 %v1256_v35, %v2203_v23  ;;  %v940_v35 = vstv %s2316_s29 }
 0x19e   : > { %v726_v49 = vpop.permute.xlu1 %725  ;;  %v738_v51 = vpop.permute.xlu0 %737 }
 0x19f   : > { %v743_v57 = vadd.f32 %v738_v51, %v729_v48  ;;  %v730_v59 = vadd.f32 %v726_v49, %v716_v53  ;;  %v1271_v48 = vmul.f32 %v1270_v45, %v2183_v2  ;;  %v1284_v51 = vstv %s2265_s21 }
 0x1a0   : > { %1179 = vrot.lane.b32.xlu1 %v1174_v1, %s1745_s3  ;;  %1191 = vrot.lane.b32.xlu0 %v1187_v52, %s1746_s6  ;;  %v1272_v53 = vmul.f32 %v1270_v45, %v2192_v11 }
 0x1a1   : > { %v753_v63 = vadd.f32 %v751_v54, %v743_v57  ;;  %v1285_v54 = vmul.f32 %v1284_v51, %v2194_v12 }
 0x1a2   : > { %v740_v0 = vpop.permute.xlu1 %739  ;;  %v768_v3 = vpop.permute.xlu0 %767 }
 0x1a3   : > { %v759_v31 = vadd.f32 %v757_v62, %v753_v63  ;;  %v744_v7 = vadd.f32 %v740_v0, %v730_v59  ;;  %v2285_v59 = vld [vmem:[#allocation2 + $0x6] sm:$0xff]  ;;  %v1314_v62 = vstv %s2272_s22 }
 0x1a4   : > { %1193 = vrot.lane.b32.xlu1 %v1188_v4, %s1746_s6  ;;  %1205 = vrot.lane.b32.xlu0 %v1201_v5, %s1746_s6  ;;  %v1315_v4 = vmul.f32 %v1314_v62, %v2285_v59 }
 0x1a5   : > { %v754_v9 = vadd.f32 %v752_v6, %v744_v7  ;;  %v773_v10 = vadd.f32 %v768_v3, %v759_v31  ;;  %v1286_v3 = vmul.f32 %v1284_v51, %v2203_v23  ;;  %v2294_v6 = vld [vmem:[#allocation2 + $0xe] sm:$0xff]  ;;  %v2296_v7 = vld [vmem:[#allocation2 + $0x1e] sm:$0xff] }
 0x1a6   : > { %v770_v13 = vpop.permute.xlu1 %769  ;;  %v782_v14 = vpop.permute.xlu0 %781 }
 0x1a7   : > { %v760_v46 = vadd.f32 %v758_v44, %v754_v9  ;;  %v787_v19 = vadd.f32 %v782_v14, %v773_v10  ;;  %v1316_v10 = vmul.f32 %v1314_v62, %v2294_v6 }
 0x1a8   : > { %1207 = vrot.lane.b32.xlu1 %v1202_v15, %s1746_s6  ;;  %1219 = vrot.lane.b32.xlu0 %v1215_v17, %s1747_s11  ;;  %v2305_v17 = vld [vmem:[#allocation2 + $0x26] sm:$0xff] }
 0x1a9   : > { %v774_v20 = vadd.f32 %v770_v13, %v760_v46  ;;  %v1329_v13 = vmul.f32 %v1328_v8, %v2296_v7  ;;  %v1342_v46 = vstv %s2288_s24 }
 0x1aa   : > { %v784_v55 = vpop.permute.xlu1 %783  ;;  %v796_v21 = vpop.permute.xlu0 %795  ;;  %v1344_v29 = vmul.f32 %v1342_v46, %v2294_v6 }
 0x1ab   : > { %v788_v24 = vadd.f32 %v784_v55, %v774_v20  ;;  %v801_v25 = vadd.f32 %v796_v21, %v787_v19  ;;  %v1330_v20 = vmul.f32 %v1328_v8, %v2305_v17  ;;  %v1343_v55 = vmul.f32 %v1342_v46, %v2285_v59 }
 0x1ac   : > { %1221 = vrot.lane.b32.xlu1 %v1216_v22, %s1747_s11  ;;  %1233 = vrot.lane.b32.xlu0 %v1229_v38, %s1747_s11  ;;  %v1356_v38 = vstv %s2299_s25 }
 0x1ae   : > { %v798_v30 = vpop.permute.xlu1 %797  ;;  %v810_v32 = vpop.permute.xlu0 %809 }
 0x1af   : > { %v802_v18 = vadd.f32 %v798_v30, %v788_v24  ;;  %v815_v56 = vadd.f32 %v810_v32, %v801_v25  ;;  %v1357_v30 = vmul.f32 %v1356_v38, %v2296_v7 }
 0x1b0   : > { %1235 = vrot.lane.b32.xlu1 %v1230_v39, %s1747_s11  ;;  %1247 = vrot.lane.b32.xlu0 %v1243_v33, %s1748_s14  ;;  %v1370_v39 = vstv %s2308_s26  ;;  %v934_v33 = vstv %s2312_s27 }
 0x1b1   : > { %v936_v51 = vmul.f32 %v934_v33, %v2096_v27 }
 0x1b2   : > { %v812_v43 = vpop.permute.xlu1 %811  ;;  %v824_v36 = vpop.permute.xlu0 %823 }
 0x1b3   : > { %v816_v41 = vadd.f32 %v812_v43, %v802_v18  ;;  %v829_v42 = vadd.f32 %v824_v36, %v815_v56  ;;  %v1358_v36 = vmul.f32 %v1356_v38, %v2305_v17 }
 0x1b4   : > { %1249 = vrot.lane.b32.xlu1 %v1244_v37, %s1748_s14  ;;  %1261 = vrot.lane.b32.xlu0 %v1257_v60, %s1748_s14  ;;  %v1371_v37 = vmul.f32 %v1370_v39, %v2285_v59  ;;  %v935_v60 = vmul.f32 %v934_v33, %v2087_v16 }
 0x1b6   : > { %v826_v26 = vpop.permute.xlu1 %825  ;;  %v838_v47 = vpop.permute.xlu0 %837 }
 0x1b7   : > { %v830_v49 = vadd.f32 %v826_v26, %v816_v41  ;;  %v843_v50 = vadd.f32 %v838_v47, %v829_v42  ;;  %v1384_v42 = vstv %s2319_s30  ;;  %v941_v26 = vmul.f32 %v940_v35, %v2098_v28 }
 0x1b8   : > { %1263 = vrot.lane.b32.xlu1 %v1258_v61, %s1748_s14  ;;  %1275 = vrot.lane.b32.xlu0 %v1271_v48, %s1749_s17  ;;  %v1385_v16 = vmul.f32 %v1384_v42, %v2296_v7  ;;  %v942_v28 = vmul.f32 %v940_v35, %v2107_v40 }
 0x1ba   : > { %v840_v1 = vpop.permute.xlu1 %839  ;;  %v852_v52 = vpop.permute.xlu0 %851 }
 0x1bb   : > { %v844_v57 = vadd.f32 %v840_v1, %v830_v49  ;;  %v857_v58 = vadd.f32 %v852_v52, %v843_v50  ;;  %v1372_v49 = vmul.f32 %v1370_v39, %v2294_v6  ;;  %v1398_v52 = vstv %s2326_s4 }
 0x1bc   : > { %1277 = vrot.lane.b32.xlu1 %v1272_v53, %s1749_s17  ;;  %1289 = vrot.lane.b32.xlu0 %v1285_v54, %s1749_s17  ;;  %v1399_v62 = vmul.f32 %v1398_v52, %v2285_v59 }
 0x1be   : > { %v854_v63 = vpop.permute.xlu1 %853  ;;  %v866_v0 = vpop.permute.xlu0 %865 }
 0x1bf   : > { %v858_v5 = vadd.f32 %v854_v63, %v844_v57  ;;  %v871_v31 = vadd.f32 %v866_v0, %v857_v58  ;;  %v1386_v58 = vmul.f32 %v1384_v42, %v2305_v17 }
 0x1c0   : > { %1291 = vrot.lane.b32.xlu1 %v1286_v3, %s1749_s17  ;;  %1319 = vrot.lane.b32.xlu0 %v1315_v4, %s1744_s28  ;;  %v1400_v4 = vmul.f32 %v1398_v52, %v2294_v6 }
 0x1c2   : > { %v868_v44 = vpop.permute.xlu1 %867  ;;  %v880_v9 = vpop.permute.xlu0 %879 }
 0x1c3   : > { %v872_v14 = vadd.f32 %v868_v44, %v858_v5  ;;  %v885_v15 = vadd.f32 %v880_v9, %v871_v31  ;;  %v1426_v5 = vstv %s2345_s5 }
 0x1c4   : > { %1321 = vrot.lane.b32.xlu1 %v1316_v10, %s1744_s28  ;;  %1333 = vrot.lane.b32.xlu0 %v1329_v13, %s1744_s28  ;;  %v1427_v9 = vmul.f32 %v1426_v5, %v2285_v59 }
 0x1c6   : > { %v882_v19 = vpop.permute.xlu1 %881  ;;  %v894_v34 = vpop.permute.xlu0 %893 }
 0x1c7   : > { %v886_v21 = vadd.f32 %v882_v19, %v872_v14  ;;  %v899_v22 = vadd.f32 %v894_v34, %v885_v15  ;;  %v1428_v15 = vmul.f32 %v1426_v5, %v2294_v6  ;;  %v1454_v19 = vstv %s1671_s7 }
 0x1c8   : > { %1335 = vrot.lane.b32.xlu1 %v1330_v20, %s1744_s28  ;;  %1347 = vrot.lane.b32.xlu0 %v1343_v55, %s1745_s3  ;;  %s2336_s28 = sld [smem:[#allocation3 + $0xae]] }
 0x1ca   : > { %v896_v24 = vpop.permute.xlu1 %895  ;;  %v908_v25 = vpop.permute.xlu0 %907 }
 0x1cb   : > { %v900_v32 = vadd.f32 %v896_v24, %v886_v21  ;;  %v913_v18 = vadd.f32 %v908_v25, %v899_v22  ;;  %v1455_v21 = vmul.f32 %v1454_v19, %v2285_v59 }
 0x1cc   : > { %1349 = vrot.lane.b32.xlu1 %v1344_v29, %s1745_s3  ;;  %1361 = vrot.lane.b32.xlu0 %v1357_v30, %s1745_s3  ;;  %v1456_v29 = vmul.f32 %v1454_v19, %v2294_v6 }
 0x1ce   : > { %v910_v56 = vpop.permute.xlu1 %909  ;;  %v922_v43 = vpop.permute.xlu0 %921  ;;  %v1412_v27 = vstv %s2336_s28 }
 0x1cf   : > { %v927_v41 = vadd.f32 %v922_v43, %v913_v18  ;;  %v914_v45 = vadd.f32 %v910_v56, %v900_v32  ;;  %v1413_v40 = vmul.f32 %v1412_v27, %v2296_v7  ;;  %v1414_v44 = vmul.f32 %v1412_v27, %v2305_v17 }
 0x1d0   : > { %1363 = vrot.lane.b32.xlu1 %v1358_v36, %s1745_s3  ;;  %1375 = vrot.lane.b32.xlu0 %v1371_v37, %s1746_s6  ;;  %s1670_s3 = sld [smem:[#allocation3 + $0xaf]] }
 0x1d1   : > { %v937_v47 = vadd.f32 %v935_v60, %v927_v41 }
 0x1d2   : > { %v924_v61 = vpop.permute.xlu1 %923  ;;  %v952_v48 = vpop.permute.xlu0 %951 }
 0x1d3   : > { %v943_v50 = vadd.f32 %v941_v26, %v937_v47  ;;  %v928_v1 = vadd.f32 %v924_v61, %v914_v45 }
 0x1d4   : > { %1377 = vrot.lane.b32.xlu1 %v1372_v49, %s1746_s6  ;;  %1389 = vrot.lane.b32.xlu0 %v1385_v16, %s1746_s6 }
 0x1d5   : > { %v938_v53 = vadd.f32 %v936_v51, %v928_v1  ;;  %v957_v22 = vadd.f32 %v952_v48, %v943_v50 }
 0x1d6   : > { %v954_v54 = vpop.permute.xlu1 %953  ;;  %v966_v57 = vpop.permute.xlu0 %965  ;;  %v1440_v10 = vstv %s1670_s3 }
 0x1d7   : > { %v944_v63 = vadd.f32 %v942_v28, %v938_v53  ;;  %v1441_v46 = vmul.f32 %v1440_v10, %v2296_v7  ;;  %v1442_v55 = vmul.f32 %v1440_v10, %v2305_v17  ;;  %v971_v39 = vadd.f32 %v966_v57, %v957_v22 }
 0x1d8   : > { %1391 = vrot.lane.b32.xlu1 %v1386_v58, %s1746_s6  ;;  %1403 = vrot.lane.b32.xlu0 %v1399_v62, %s1747_s11  ;;  %s1672_s6 = sld [smem:[#allocation3 + $0xb0]] }
 0x1d9   : > { %v958_v32 = vadd.f32 %v954_v54, %v944_v63 }
 0x1da   : > { %v968_v0 = vpop.permute.xlu1 %967  ;;  %v980_v3 = vpop.permute.xlu0 %979 }
 0x1db   : > { %v985_v33 = vadd.f32 %v980_v3, %v971_v39  ;;  %v972_v43 = vadd.f32 %v968_v0, %v958_v32 }
 0x1dc   : > { %1405 = vrot.lane.b32.xlu1 %v1400_v4, %s1747_s11  ;;  %1417 = vrot.lane.b32.xlu0 %v1413_v40, %s1747_s11 }
 0x1de   : > { %v982_v31 = vpop.permute.xlu1 %981  ;;  %v994_v8 = vpop.permute.xlu0 %993  ;;  %v1468_v38 = vstv %s1672_s6 }
 0x1df   : > { %v1469_v30 = vmul.f32 %v1468_v38, %v2296_v7  ;;  %v1470_v35 = vmul.f32 %v1468_v38, %v2305_v17  ;;  %v999_v36 = vadd.f32 %v994_v8, %v985_v33  ;;  %v986_v37 = vadd.f32 %v982_v31, %v972_v43 }
 0x1e0   : > { %1419 = vrot.lane.b32.xlu1 %v1414_v44, %s1747_s11  ;;  %1431 = vrot.lane.b32.xlu0 %v1427_v9, %s1748_s14  ;;  %s1645_s11 = sld [smem:[#allocation3 + $0x23]] }
 0x1e2   : > { %v996_v13 = vpop.permute.xlu1 %995  ;;  %v1008_v14 = vpop.permute.xlu0 %1007 }
 0x1e3   : > { %v1013_v60 = vadd.f32 %v1008_v14, %v999_v36  ;;  %v1000_v45 = vadd.f32 %v996_v13, %v986_v37 }
 0x1e4   : > { %1433 = vrot.lane.b32.xlu1 %v1428_v15, %s1748_s14  ;;  %1445 = vrot.lane.b32.xlu0 %v1441_v46, %s1748_s14 }
 0x1e6   : > { %v1010_v34 = vpop.permute.xlu1 %1009  ;;  %v1022_v20 = vpop.permute.xlu0 %1021  ;;  %v1118_v57 = vstv %s1645_s11 }
 0x1e7   : > { %v1027_v26 = vadd.f32 %v1022_v20, %v1013_v60  ;;  %v1014_v47 = vadd.f32 %v1010_v34, %v1000_v45  ;;  %v1119_v4 = vmul.f32 %v1118_v57, %v2183_v2  ;;  %v1120_v10 = vmul.f32 %v1118_v57, %v2192_v11 }
 0x1e8   : > { %1447 = vrot.lane.b32.xlu1 %v1442_v55, %s1748_s14  ;;  %1459 = vrot.lane.b32.xlu0 %v1455_v21, %s1749_s17  ;;  %s1646_s14 = sld [smem:[#allocation3 + $0xa3]] }
 0x1ea   : > { %v1024_v24 = vpop.permute.xlu1 %1023  ;;  %v1036_v25 = vpop.permute.xlu0 %1035 }
 0x1eb   : > { %v1041_v61 = vadd.f32 %v1036_v25, %v1027_v26  ;;  %v1028_v16 = vadd.f32 %v1024_v24, %v1014_v47 }
 0x1ec   : > { %1461 = vrot.lane.b32.xlu1 %v1456_v29, %s1749_s17  ;;  %1473 = vrot.lane.b32.xlu0 %v1469_v30, %s1749_s17 }
 0x1ee   : > { %v1038_v18 = vpop.permute.xlu1 %1037  ;;  %v1050_v56 = vpop.permute.xlu0 %1049  ;;  %v1124_v0 = vstv %s1646_s14 }
 0x1ef   : > { %v1055_v50 = vadd.f32 %v1050_v56, %v1041_v61  ;;  %v1042_v51 = vadd.f32 %v1038_v18, %v1028_v16  ;;  %v1125_v8 = vmul.f32 %v1124_v0, %v2194_v12  ;;  %v1126_v46 = vmul.f32 %v1124_v0, %v2203_v23 }
 0x1f0   : > { %1475 = vrot.lane.b32.xlu1 %v1470_v35, %s1749_s17  ;;  %s1659_s17 = sld [smem:[#allocation3 + $0x2a]] }
 0x1f2   : > { %v1052_v41 = vpop.permute.xlu1 %1051  ;;  %v1064_v42 = vpop.permute.xlu0 %1063 }
 0x1f3   : > { %v1069_v1 = vadd.f32 %v1064_v42, %v1055_v50  ;;  %v1056_v53 = vadd.f32 %v1052_v41, %v1042_v51 }
 0x1f6   : > { %v1066_v48 = vpop.permute.xlu1 %1065  ;;  %v1078_v49 = vpop.permute.xlu0 %1077 }
 0x1f7   : > { %v1083_v54 = vadd.f32 %v1078_v49, %v1069_v1  ;;  %v1070_v58 = vadd.f32 %v1066_v48, %v1056_v53  ;;  %v1302_v53 = vstv %s1659_s17 }
 0x1f8   : > { %v1303_v0 = vmul.f32 %v1302_v53, %v2285_v59 }
 0x1fa   : > { %v1080_v52 = vpop.permute.xlu1 %1079  ;;  %v1092_v28 = vpop.permute.xlu0 %1091 }
 0x1fb   : > { %v1097_v62 = vadd.f32 %v1092_v28, %v1083_v54  ;;  %v1084_v3 = vadd.f32 %v1080_v52, %v1070_v58 }
 0x1fe   : > { %v1094_v63 = vpop.permute.xlu1 %1093  ;;  %v1106_v27 = vpop.permute.xlu0 %1105 }
 0x1ff   : > { %v1111_v40 = vadd.f32 %v1106_v27, %v1097_v62  ;;  %v1098_v5 = vadd.f32 %v1094_v63, %v1084_v3  ;;  %v1308_v63 = vstv %s1660_s8 }
 0x201   : > { %v1121_v31 = vadd.f32 %v1119_v4, %v1111_v40 }
 0x202   : > { %v1108_v44 = vpop.permute.xlu1 %1107  ;;  %v1136_v9 = vpop.permute.xlu0 %1135 }
 0x203   : > { %v1112_v13 = vadd.f32 %v1108_v44, %v1098_v5  ;;  %v1127_v14 = vadd.f32 %v1125_v8, %v1121_v31  ;;  %v1309_v5 = vmul.f32 %v1308_v63, %v2296_v7  ;;  %v1304_v44 = vmul.f32 %v1302_v53, %v2294_v6 }
 0x205   : > { %v1122_v15 = vadd.f32 %v1120_v10, %v1112_v13  ;;  %v1141_v29 = vadd.f32 %v1136_v9, %v1127_v14  ;;  %v1310_v14 = vmul.f32 %v1308_v63, %v2305_v17 }
 0x206   : > { %v1138_v19 = vpop.permute.xlu1 %1137  ;;  %v1150_v34 = vpop.permute.xlu0 %1149 }
 0x207   : > { %v1128_v20 = vadd.f32 %v1126_v46, %v1122_v15  ;;  %v1155_v39 = vadd.f32 %v1150_v34, %v1141_v29 }
 0x209   : > { %v1142_v11 = vadd.f32 %v1138_v19, %v1128_v20 }
 0x20a   : > { %v1152_v55 = vpop.permute.xlu1 %1151  ;;  %v1164_v21 = vpop.permute.xlu0 %1163 }
 0x20b   : > { %v1169_v33 = vadd.f32 %v1164_v21, %v1155_v39  ;;  %v1156_v23 = vadd.f32 %v1152_v55, %v1142_v11 }
 0x20e   : > { %v1166_v2 = vpop.permute.xlu1 %1165  ;;  %v1178_v22 = vpop.permute.xlu0 %1177 }
 0x20f   : > { %v1183_v35 = vadd.f32 %v1178_v22, %v1169_v33  ;;  %v1170_v43 = vadd.f32 %v1166_v2, %v1156_v23 }
 0x212   : > { %v1180_v38 = vpop.permute.xlu1 %1179  ;;  %v1192_v24 = vpop.permute.xlu0 %1191 }
 0x213   : > { %v1197_v36 = vadd.f32 %v1192_v24, %v1183_v35  ;;  %v1184_v41 = vadd.f32 %v1180_v38, %v1170_v43 }
 0x216   : > { %v1194_v25 = vpop.permute.xlu1 %1193  ;;  %v1206_v12 = vpop.permute.xlu0 %1205 }
 0x217   : > { %v1211_v42 = vadd.f32 %v1206_v12, %v1197_v36  ;;  %v1198_v45 = vadd.f32 %v1194_v25, %v1184_v41 }
 0x21a   : > { %v1208_v30 = vpop.permute.xlu1 %1207  ;;  %v1220_v32 = vpop.permute.xlu0 %1219 }
 0x21b   : > { %v1225_v26 = vadd.f32 %v1220_v32, %v1211_v42  ;;  %v1212_v48 = vadd.f32 %v1208_v30, %v1198_v45 }
 0x21e   : > { %v1222_v18 = vpop.permute.xlu1 %1221  ;;  %v1234_v56 = vpop.permute.xlu0 %1233 }
 0x21f   : > { %v1239_v49 = vadd.f32 %v1234_v56, %v1225_v26  ;;  %v1226_v16 = vadd.f32 %v1222_v18, %v1212_v48 }
 0x222   : > { %v1236_v37 = vpop.permute.xlu1 %1235  ;;  %v1248_v60 = vpop.permute.xlu0 %1247 }
 0x223   : > { %v1253_v50 = vadd.f32 %v1248_v60, %v1239_v49  ;;  %v1240_v52 = vadd.f32 %v1236_v37, %v1226_v16 }
 0x226   : > { %v1250_v47 = vpop.permute.xlu1 %1249  ;;  %v1262_v61 = vpop.permute.xlu0 %1261 }
 0x227   : > { %v1267_v28 = vadd.f32 %v1262_v61, %v1253_v50  ;;  %v1254_v54 = vadd.f32 %v1250_v47, %v1240_v52 }
 0x22a   : > { %v1264_v51 = vpop.permute.xlu1 %1263  ;;  %v1276_v1 = vpop.permute.xlu0 %1275 }
 0x22b   : > { %v1281_v57 = vadd.f32 %v1276_v1, %v1267_v28  ;;  %v1268_v27 = vadd.f32 %v1264_v51, %v1254_v54 }
 0x22e   : > { %v1278_v58 = vpop.permute.xlu1 %1277  ;;  %v1290_v62 = vpop.permute.xlu0 %1289 }
 0x22f   : > { %v1295_v3 = vadd.f32 %v1290_v62, %v1281_v57  ;;  %v1282_v4 = vadd.f32 %v1278_v58, %v1268_v27 }
 0x231   : > { %v1305_v40 = vadd.f32 %v1303_v0, %v1295_v3 }
 0x232   : > { %v1292_v31 = vpop.permute.xlu1 %1291  ;;  %v1320_v8 = vpop.permute.xlu0 %1319 }
 0x233   : > { %v1296_v9 = vadd.f32 %v1292_v31, %v1282_v4  ;;  %v1311_v10 = vadd.f32 %v1309_v5, %v1305_v40 }
 0x235   : > { %v1306_v13 = vadd.f32 %v1304_v44, %v1296_v9  ;;  %v1325_v38 = vadd.f32 %v1320_v8, %v1311_v10 }
 0x236   : > { %v1322_v15 = vpop.permute.xlu1 %1321  ;;  %v1334_v46 = vpop.permute.xlu0 %1333 }
 0x237   : > { %v1312_v19 = vadd.f32 %v1310_v14, %v1306_v13  ;;  %v1339_v12 = vadd.f32 %v1334_v46, %v1325_v38 }
 0x239   : > { %v1326_v6 = vadd.f32 %v1322_v15, %v1312_v19 }
 0x23a   : > { %v1336_v34 = vpop.permute.xlu1 %1335  ;;  %v1348_v20 = vpop.permute.xlu0 %1347 }
 0x23b   : > { %v1353_v29 = vadd.f32 %v1348_v20, %v1339_v12  ;;  %v1340_v17 = vadd.f32 %v1336_v34, %v1326_v6 }
 0x23e   : > { %v1350_v59 = vpop.permute.xlu1 %1349  ;;  %v1362_v55 = vpop.permute.xlu0 %1361 }
 0x23f   : > { %v1367_v11 = vadd.f32 %v1362_v55, %v1353_v29  ;;  %v1354_v39 = vadd.f32 %v1350_v59, %v1340_v17 }
 0x242   : > { %v1364_v21 = vpop.permute.xlu1 %1363  ;;  %v1376_v2 = vpop.permute.xlu0 %1375 }
 0x243   : > { %v1381_v33 = vadd.f32 %v1376_v2, %v1367_v11  ;;  %v1368_v23 = vadd.f32 %v1364_v21, %v1354_v39 }
 0x246   : > { %v1378_v22 = vpop.permute.xlu1 %1377  ;;  %v1390_v7 = vpop.permute.xlu0 %1389 }
 0x247   : > { %v1395_v35 = vadd.f32 %v1390_v7, %v1381_v33  ;;  %v1382_v43 = vadd.f32 %v1378_v22, %v1368_v23 }
 0x24a   : > { %v1392_v24 = vpop.permute.xlu1 %1391  ;;  %v1404_v25 = vpop.permute.xlu0 %1403 }
 0x24b   : > { %v1409_v36 = vadd.f32 %v1404_v25, %v1395_v35  ;;  %v1396_v41 = vadd.f32 %v1392_v24, %v1382_v43 }
 0x24e   : > { %v1406_v30 = vpop.permute.xlu1 %1405  ;;  %v1418_v32 = vpop.permute.xlu0 %1417 }
 0x24f   : > { %v1423_v42 = vadd.f32 %v1418_v32, %v1409_v36  ;;  %v1410_v45 = vadd.f32 %v1406_v30, %v1396_v41 }
 0x252   : > { %v1420_v18 = vpop.permute.xlu1 %1419  ;;  %v1432_v56 = vpop.permute.xlu0 %1431 }
 0x253   : > { %v1437_v26 = vadd.f32 %v1432_v56, %v1423_v42  ;;  %v1424_v48 = vadd.f32 %v1420_v18, %v1410_v45 }
 0x256   : > { %v1434_v37 = vpop.permute.xlu1 %1433  ;;  %v1446_v60 = vpop.permute.xlu0 %1445 }
 0x257   : > { %v1451_v49 = vadd.f32 %v1446_v60, %v1437_v26  ;;  %v1438_v16 = vadd.f32 %v1434_v37, %v1424_v48 }
 0x25a   : > { %v1448_v47 = vpop.permute.xlu1 %1447  ;;  %v1460_v61 = vpop.permute.xlu0 %1459 }
 0x25b   : > { %v1465_v50 = vadd.f32 %v1460_v61, %v1451_v49  ;;  %v1452_v52 = vadd.f32 %v1448_v47, %v1438_v16 }
 0x25e   : > { %v1462_v51 = vpop.permute.xlu1 %1461  ;;  %v1474_v1 = vpop.permute.xlu0 %1473 }
 0x25f   : > { %v1479_v28 = vadd.f32 %v1474_v1, %v1465_v50  ;;  %v1466_v53 = vadd.f32 %v1462_v51, %v1452_v52 }
 0x261   : > { %v1673_v54 = vmul.f32 -1.442695, %v1479_v28 }
 0x262   : > { %v1476_v57 = vpop.permute.xlu1 %1475 }
 0x263   : > { %1706 = vpow2.f32 %v1673_v54  ;;  %v1480_v58 = vadd.f32 %v1476_v57, %v1466_v53 }
 0x265   : > { %v1674_v62 = vmul.f32 -1.442695, %v1480_v58 }
 0x267   : > { %1708 = vpow2.f32 %v1674_v62 }
 0x26d   : > { %v1707_v63 = vpop.eup %1706 }
 0x26e   : > { %v1487_v27 = vadd.f32 1.0, %v1707_v63 }
 0x270   : > { %1710 = vrcp.f32 %v1487_v27 }
 0x271   : > { %v1709_v0 = vpop.eup %1708 }
 0x272   : > { %v1488_v3 = vadd.f32 1.0, %v1709_v0 }
 0x274   : > { %1712 = vrcp.f32 %v1488_v3 }
 0x27a   : > { %v1711_v4 = vpop.eup %1710 }
 0x27b   : > { %1494 = vst.msk [vmem:[%s157_s16] sm:$0xff] %vm1493_vm3, %v1711_v4 }
 0x27e   : > { %v1713_v40 = vpop.eup %1712 }
 0x27f   : > { %1495 = vst.msk [vmem:[%s157_s16 + $0x8] sm:$0xff] %vm1493_vm3, %v1713_v40 }
 0x280 PF: > { %s13_s9 = sadd.s32 1, %s1739_s9  }
 0x281   : > { %p10_p1 = scmp.ge.s32.totalorder %s13_s9, 4  }
 0x283   :  { %12 = sbr.rel (!%p10_p1) target bundleno = 1 (0x1), region = 65 }
 0x28a   :  { %1517 = vsyncpa [#allocation4], 1 }
 0x28b   :  { %1519 = vsyncpa [#allocation4 + $0x1], 1 }

</bundles_post_ra>
